<compile_context>
chip_gen: v5e
topology: v5e:2x2
jax: 0.10.0
libtpu: 0.0.40
codegen_flags: <defaults>
</compile_context>

<pallas_src>
import functools

import jax
import jax.numpy as jnp
from jax.experimental import pallas as pl
from jax.experimental.pallas import tpu as pltpu

EPS = 1e-5  # nn.LayerNorm default eps

_CompilerParams = getattr(pltpu, "CompilerParams", None)
if _CompilerParams is None:  # older naming fallback
    _CompilerParams = pltpu.TPUCompilerParams


# ------------------------- in-kernel helpers -------------------------------

def _layernorm(x):
    # LayerNorm over last dim, elementwise_affine=False.
    # Single-pass form: var = E[x^2] - mu^2 (two independent lane reductions).
    mu = jnp.mean(x, axis=-1, keepdims=True)
    ex2 = jnp.mean(x * x, axis=-1, keepdims=True)
    var = jnp.maximum(ex2 - mu * mu, 0.0)
    return (x - mu) * jax.lax.rsqrt(var + EPS)


# ------------------------------ kernel --------------------------------------

def utility_block_kernel(t_ref, src_ref,
                         wq_ref, wkv_ref, bq_ref, bkv_ref,
                         wo_ref, bo_ref,
                         lw1_ref, lw2_ref, lb_ref,
                         o_ref, *, n_head):
    f32 = jnp.float32
    S, H = t_ref.shape                     # (seq, hidden) for this batch element
    hd = H // n_head
    mxu = wq_ref.dtype                     # MXU operand dtype (bf16 or f32)

    t = t_ref[...].astype(f32)             # (S, H)
    src = src_ref[...].astype(f32)         # (2S, H) = [source_a ; source_b]

    # ---- dense Q / (K|V) projections; 1/sqrt(hd) already folded into wq, bq --
    q2 = jnp.dot(t.astype(mxu), wq_ref[...],
                 preferred_element_type=f32) + bq_ref[...]           # (S, H)
    kv = jnp.dot(src.astype(mxu), wkv_ref[...],
                 preferred_element_type=f32) + bkv_ref[...]          # (2S, 2H)

    # ---- split into heads once (static slices); g = source * NH + head ------
    q_sl, k_sl, v_sl = [], [], []
    for n in range(n_head):
        q_sl.append(q2[:, n * hd:(n + 1) * hd])                      # (S, hd)
    for x in range(2):
        rows = slice(x * S, (x + 1) * S)
        for n in range(n_head):
            lo = n * hd
            k_sl.append(kv[rows, lo:lo + hd])                        # (S, hd)
            v_sl.append(kv[rows, H + lo:H + lo + hd])                # (S, hd)
    qh = jnp.stack(q_sl + q_sl, axis=0).astype(mxu)                  # (2*NH, S, hd)
    kh = jnp.stack(k_sl, axis=0).astype(mxu)                         # (2*NH, S, hd)
    vh = jnp.stack(v_sl, axis=0).astype(mxu)                         # (2*NH, S, hd)

    # ---- one batched attention stream over (source x head) ------------------
    s = jnp.einsum('gqd,gkd->gqk', qh, kh, preferred_element_type=f32)
    s = s - jnp.max(s, axis=-1, keepdims=True)
    p = jnp.exp(s)
    p = p * pl.reciprocal(jnp.sum(p, axis=-1, keepdims=True), approx=False)
    o = jnp.einsum('gqk,gkd->gqd', p.astype(mxu), vh,
                   preferred_element_type=f32)                       # (2*NH, S, hd)

    # ---- merge heads back into lanes once; dense out-proj folds the head-sum
    o_cat = jnp.concatenate(
        [jnp.concatenate([o[x * n_head + n] for n in range(n_head)], axis=-1)
         for x in range(2)], axis=0)                                 # (2S, H)
    attn = jnp.dot(o_cat.astype(mxu), wo_ref[...],
                   preferred_element_type=f32) + bo_ref[...]         # (2S, H)

    out_a = attn[:S]
    out_b = attn[S:]
    na = _layernorm(out_a + t)
    nb = _layernorm(out_b + t)

    # Linear(2H->H) as two K-split (H,H) dots; ReLU; dropout = eval identity.
    # TODO(synk): training-mode dropout would use pltpu.prng_seed/prng_random_bits.
    lin = (jnp.dot(na.astype(mxu), lw1_ref[...], preferred_element_type=f32)
           + jnp.dot(nb.astype(mxu), lw2_ref[...], preferred_element_type=f32)
           + lb_ref[...])
    lin = jnp.maximum(lin, 0.0)

    o_ref[...] = _layernorm(lin + t).astype(o_ref.dtype)


# ------------------------------ wrapper --------------------------------------

def utility_block(target, source_a, source_b, params, n_head=8,
                  mxu_dtype=jnp.bfloat16):
    B, S, H = target.shape
    assert H % n_head == 0, "hidden_dim must be divisible by n_head"
    hd = H // n_head
    in_w, in_b, out_w, out_b, lin_w, lin_b = params
    f32 = jnp.float32
    scale = 1.0 / (hd ** 0.5)

    # ---- host-side weight prep (transpose / pack once; amortized under jit) --
    wq_d = (in_w[:H] * scale).T.astype(mxu_dtype)                    # (H, H), scale folded
    wkv_d = jnp.concatenate([in_w[H:2 * H].T, in_w[2 * H:].T],
                            axis=1).astype(mxu_dtype)                # (H, 2H)
    bq_d = (in_b[:H] * scale).reshape(1, H).astype(f32)
    bkv_d = jnp.concatenate([in_b[H:2 * H], in_b[2 * H:]]).reshape(1, 2 * H).astype(f32)
    wo_d = out_w.T.astype(mxu_dtype)                                 # (H, H)
    bo_d = out_b.reshape(1, H).astype(f32)
    lw1_d = lin_w[:, :H].T.astype(mxu_dtype)                         # (H, H)  acts on out_a
    lw2_d = lin_w[:, H:].T.astype(mxu_dtype)                         # (H, H)  acts on out_b
    lb_d = lin_b.reshape(1, H).astype(f32)

    # Both sources of one batch element sit in one (2S, H) row slab.
    src = jnp.concatenate([source_a, source_b], axis=1)              # (B, 2S, H)

    kernel = functools.partial(utility_block_kernel, n_head=n_head)

    def _full(a):
        return pl.BlockSpec(a.shape, lambda b: (0,) * a.ndim)

    grid_spec = pltpu.PrefetchScalarGridSpec(
        num_scalar_prefetch=0,
        grid=(B,),                                    # >= 2 independent steps
        in_specs=[
            pl.BlockSpec((None, S, H), lambda b: (b, 0, 0)),         # target tile
            pl.BlockSpec((None, 2 * S, H), lambda b: (b, 0, 0)),     # [src_a; src_b] tile
            _full(wq_d), _full(wkv_d), _full(bq_d), _full(bkv_d),
            _full(wo_d), _full(bo_d), _full(lw1_d), _full(lw2_d), _full(lb_d),
        ],
        out_specs=pl.BlockSpec((None, S, H), lambda b: (b, 0, 0)),
    )

    out = pl.pallas_call(
        kernel,
        out_shape=jax.ShapeDtypeStruct((B, S, H), target.dtype),
        grid_spec=grid_spec,
        compiler_params=_CompilerParams(
            dimension_semantics=("parallel",)),       # megacore sharding on v7x
    )(target, src, wq_d, wkv_d, bq_d, bkv_d, wo_d, bo_d, lw1_d, lw2_d, lb_d)
    return out


# ---------------------------- pure-JAX reference ------------------------------

def utility_block_ref(target, source_a, source_b, params, n_head=8):
    in_w, in_b, out_w, out_b, lin_w, lin_b = params
    B, S, H = target.shape
    hd = H // n_head

    def mha(q_in, kv_in):
        q = q_in @ in_w[:H].T + in_b[:H]
        k = kv_in @ in_w[H:2 * H].T + in_b[H:2 * H]
        v = kv_in @ in_w[2 * H:].T + in_b[2 * H:]
        qh = q.reshape(B, S, n_head, hd).transpose(0, 2, 1, 3)
        kh = k.reshape(B, S, n_head, hd).transpose(0, 2, 1, 3)
        vh = v.reshape(B, S, n_head, hd).transpose(0, 2, 1, 3)
        s = jnp.einsum("bhqd,bhkd->bhqk", qh, kh) / (hd ** 0.5)
        p = jax.nn.softmax(s, axis=-1)
        o = jnp.einsum("bhqk,bhkd->bhqd", p, vh)
        o = o.transpose(0, 2, 1, 3).reshape(B, S, H)
        return o @ out_w.T + out_b

    def ln(x):
        mu = x.mean(-1, keepdims=True)
        var = ((x - mu) ** 2).mean(-1, keepdims=True)
        return (x - mu) / jnp.sqrt(var + EPS)

    with jax.default_matmul_precision("highest"):
        out_a = ln(mha(target, source_a) + target)
        out_b = ln(mha(target, source_b) + target)
        cat = jnp.concatenate([out_a, out_b], axis=-1)
        lin = jax.nn.relu(cat @ lin_w.T + lin_b)
        return ln(lin + target)


# --------------------------------- main ---------------------------------------

if __name__ == "__main__":
    B, S, H, NH = 2, 8, 32, 8   # batch, seq, hidden_dim, n_head (head_dim = 4)

    key = jax.random.PRNGKey(0)
    ks = jax.random.split(key, 9)

    # deterministic synthetic parameters (shapes match nn.MultiheadAttention +
    # nn.Linear(2H, H); LayerNorm has no affine params)
    in_w = 0.1 * jax.random.normal(ks[0], (3 * H, H), jnp.float32)   # in_proj_weight
    in_b = 0.1 * jax.random.normal(ks[1], (3 * H,), jnp.float32)     # in_proj_bias
    out_w = 0.1 * jax.random.normal(ks[2], (H, H), jnp.float32)      # out_proj.weight
    out_b = 0.1 * jax.random.normal(ks[3], (H,), jnp.float32)        # out_proj.bias
    lin_w = 0.1 * jax.random.normal(ks[4], (H, 2 * H), jnp.float32)  # linear.weight
    lin_b = 0.1 * jax.random.normal(ks[5], (H,), jnp.float32)        # linear.bias
    params = (in_w, in_b, out_w, out_b, lin_w, lin_b)

    target = jax.random.normal(ks[6], (B, S, H), jnp.float32)
    source_a = jax.random.normal(ks[7], (B, S, H), jnp.float32)
    source_b = jax.random.normal(ks[8], (B, S, H), jnp.float32)

    ref = utility_block_ref(target, source_a, source_b, params, n_head=NH)

    # Default path: bf16 MXU operands, f32 accumulation / softmax / LayerNorm.
    run_bf16 = jax.jit(functools.partial(utility_block, n_head=NH))
    out_bf16 = jax.block_until_ready(run_bf16(target, source_a, source_b, params))
    assert out_bf16.shape == (B, S, H)
    assert bool(jnp.allclose(out_bf16, ref, atol=5e-2, rtol=5e-2)), \
        "bf16-MXU path mismatch vs reference"

    # f32 MXU operands: tighter structural check of the fused pipeline.
    run_f32 = jax.jit(functools.partial(utility_block, n_head=NH,
                                        mxu_dtype=jnp.float32))
    out_f32 = jax.block_until_ready(run_f32(target, source_a, source_b, params))
    assert bool(jnp.allclose(out_f32, ref, atol=1e-2, rtol=1e-2)), \
        "f32-MXU path mismatch vs reference"

    print("KERNEL_OK")
</pallas_src>

<mosaic_0001>
module attributes {stable_mosaic.version = 11 : i64} {
  func.func @utility_block_kernel(%arg0: i32, %arg1: memref<1x8x32xf32, #tpu.memory_space<vmem>>, %arg2: memref<1x16x32xf32, #tpu.memory_space<vmem>>, %arg3: memref<32x32xbf16, #tpu.memory_space<vmem>>, %arg4: memref<32x64xbf16, #tpu.memory_space<vmem>>, %arg5: memref<1x32xf32, #tpu.memory_space<vmem>>, %arg6: memref<1x64xf32, #tpu.memory_space<vmem>>, %arg7: memref<32x32xbf16, #tpu.memory_space<vmem>>, %arg8: memref<1x32xf32, #tpu.memory_space<vmem>>, %arg9: memref<32x32xbf16, #tpu.memory_space<vmem>>, %arg10: memref<32x32xbf16, #tpu.memory_space<vmem>>, %arg11: memref<1x32xf32, #tpu.memory_space<vmem>>, %arg12: memref<1x8x32xf32, #tpu.memory_space<vmem>>) attributes {dimension_semantics = [#tpu.dimension_semantics<parallel>], iteration_bounds = array<i64: 2>, scalar_prefetch = 0 : i64, scratch_operands = 0 : i64, tpu.core_type = #tpu.core_type<tc>, window_params = [{transform_indices = @transform_0, window_bounds = array<i64: 1, 8, 32>}, {transform_indices = @transform_1, window_bounds = array<i64: 1, 16, 32>}, {pipeline_mode = #tpu.pipeline_mode<synchronous>, transform_indices = @transform_2, window_bounds = array<i64: 32, 32>}, {pipeline_mode = #tpu.pipeline_mode<synchronous>, transform_indices = @transform_3, window_bounds = array<i64: 32, 64>}, {pipeline_mode = #tpu.pipeline_mode<synchronous>, transform_indices = @transform_4, window_bounds = array<i64: 1, 32>}, {pipeline_mode = #tpu.pipeline_mode<synchronous>, transform_indices = @transform_5, window_bounds = array<i64: 1, 64>}, {pipeline_mode = #tpu.pipeline_mode<synchronous>, transform_indices = @transform_6, window_bounds = array<i64: 32, 32>}, {pipeline_mode = #tpu.pipeline_mode<synchronous>, transform_indices = @transform_7, window_bounds = array<i64: 1, 32>}, {pipeline_mode = #tpu.pipeline_mode<synchronous>, transform_indices = @transform_8, window_bounds = array<i64: 32, 32>}, {pipeline_mode = #tpu.pipeline_mode<synchronous>, transform_indices = @transform_9, window_bounds = array<i64: 32, 32>}, {pipeline_mode = #tpu.pipeline_mode<synchronous>, transform_indices = @transform_10, window_bounds = array<i64: 1, 32>}, {transform_indices = @transform_11, window_bounds = array<i64: 1, 8, 32>}]} {
    %c0 = arith.constant 0 : index
    %c0_0 = arith.constant 0 : index
    %c0_1 = arith.constant 0 : index
    %0 = vector.load %arg1[%c0, %c0_0, %c0_1] : memref<1x8x32xf32, #tpu.memory_space<vmem>>, vector<1x8x32xf32>
    %1 = vector.shape_cast %0 : vector<1x8x32xf32> to vector<8x32xf32>
    %c0_2 = arith.constant 0 : index
    %c0_3 = arith.constant 0 : index
    %c0_4 = arith.constant 0 : index
    %2 = vector.load %arg2[%c0_2, %c0_3, %c0_4] : memref<1x16x32xf32, #tpu.memory_space<vmem>>, vector<1x16x32xf32>
    %3 = vector.shape_cast %2 : vector<1x16x32xf32> to vector<16x32xf32>
    %4 = arith.truncf %1 : vector<8x32xf32> to vector<8x32xbf16>
    %c0_5 = arith.constant 0 : index
    %c0_6 = arith.constant 0 : index
    %5 = vector.load %arg3[%c0_5, %c0_6] : memref<32x32xbf16, #tpu.memory_space<vmem>>, vector<32x32xbf16>
    %cst = arith.constant dense<0.000000e+00> : vector<8x32xf32>
    %6 = tpu.matmul %4, %5, %cst {dimension_numbers = #tpu.dot_dimension_numbers<[1], [0], [0], [1], [0, 0, 1, 1], [], []>} : vector<8x32xbf16>, vector<32x32xbf16>, vector<8x32xf32> -> vector<8x32xf32>
    %c0_7 = arith.constant 0 : index
    %c0_8 = arith.constant 0 : index
    %7 = vector.load %arg5[%c0_7, %c0_8] : memref<1x32xf32, #tpu.memory_space<vmem>>, vector<1x32xf32>
    %8 = vector.broadcast %7 : vector<1x32xf32> to vector<8x32xf32>
    %9 = arith.addf %6, %8 : vector<8x32xf32>
    %10 = arith.truncf %3 : vector<16x32xf32> to vector<16x32xbf16>
    %c0_9 = arith.constant 0 : index
    %c0_10 = arith.constant 0 : index
    %11 = vector.load %arg4[%c0_9, %c0_10] : memref<32x64xbf16, #tpu.memory_space<vmem>>, vector<32x64xbf16>
    %cst_11 = arith.constant dense<0.000000e+00> : vector<16x64xf32>
    %12 = tpu.matmul %10, %11, %cst_11 {dimension_numbers = #tpu.dot_dimension_numbers<[1], [0], [0], [1], [0, 0, 1, 1], [], []>} : vector<16x32xbf16>, vector<32x64xbf16>, vector<16x64xf32> -> vector<16x64xf32>
    %c0_12 = arith.constant 0 : index
    %c0_13 = arith.constant 0 : index
    %13 = vector.load %arg6[%c0_12, %c0_13] : memref<1x64xf32, #tpu.memory_space<vmem>>, vector<1x64xf32>
    %14 = vector.broadcast %13 : vector<1x64xf32> to vector<16x64xf32>
    %15 = arith.addf %12, %14 : vector<16x64xf32>
    %16 = vector.extract_strided_slice %9 {offsets = [0, 0], sizes = [8, 4], strides = [1, 1]} : vector<8x32xf32> to vector<8x4xf32>
    %17 = vector.extract_strided_slice %9 {offsets = [0, 4], sizes = [8, 4], strides = [1, 1]} : vector<8x32xf32> to vector<8x4xf32>
    %18 = vector.extract_strided_slice %9 {offsets = [0, 8], sizes = [8, 4], strides = [1, 1]} : vector<8x32xf32> to vector<8x4xf32>
    %19 = vector.extract_strided_slice %9 {offsets = [0, 12], sizes = [8, 4], strides = [1, 1]} : vector<8x32xf32> to vector<8x4xf32>
    %20 = vector.extract_strided_slice %9 {offsets = [0, 16], sizes = [8, 4], strides = [1, 1]} : vector<8x32xf32> to vector<8x4xf32>
    %21 = vector.extract_strided_slice %9 {offsets = [0, 20], sizes = [8, 4], strides = [1, 1]} : vector<8x32xf32> to vector<8x4xf32>
    %22 = vector.extract_strided_slice %9 {offsets = [0, 24], sizes = [8, 4], strides = [1, 1]} : vector<8x32xf32> to vector<8x4xf32>
    %23 = vector.extract_strided_slice %9 {offsets = [0, 28], sizes = [8, 4], strides = [1, 1]} : vector<8x32xf32> to vector<8x4xf32>
    %24 = vector.extract_strided_slice %15 {offsets = [0, 0], sizes = [8, 4], strides = [1, 1]} : vector<16x64xf32> to vector<8x4xf32>
    %25 = vector.extract_strided_slice %15 {offsets = [0, 32], sizes = [8, 4], strides = [1, 1]} : vector<16x64xf32> to vector<8x4xf32>
    %26 = vector.extract_strided_slice %15 {offsets = [0, 4], sizes = [8, 4], strides = [1, 1]} : vector<16x64xf32> to vector<8x4xf32>
    %27 = vector.extract_strided_slice %15 {offsets = [0, 36], sizes = [8, 4], strides = [1, 1]} : vector<16x64xf32> to vector<8x4xf32>
    %28 = vector.extract_strided_slice %15 {offsets = [0, 8], sizes = [8, 4], strides = [1, 1]} : vector<16x64xf32> to vector<8x4xf32>
    %29 = vector.extract_strided_slice %15 {offsets = [0, 40], sizes = [8, 4], strides = [1, 1]} : vector<16x64xf32> to vector<8x4xf32>
    %30 = vector.extract_strided_slice %15 {offsets = [0, 12], sizes = [8, 4], strides = [1, 1]} : vector<16x64xf32> to vector<8x4xf32>
    %31 = vector.extract_strided_slice %15 {offsets = [0, 44], sizes = [8, 4], strides = [1, 1]} : vector<16x64xf32> to vector<8x4xf32>
    %32 = vector.extract_strided_slice %15 {offsets = [0, 16], sizes = [8, 4], strides = [1, 1]} : vector<16x64xf32> to vector<8x4xf32>
    %33 = vector.extract_strided_slice %15 {offsets = [0, 48], sizes = [8, 4], strides = [1, 1]} : vector<16x64xf32> to vector<8x4xf32>
    %34 = vector.extract_strided_slice %15 {offsets = [0, 20], sizes = [8, 4], strides = [1, 1]} : vector<16x64xf32> to vector<8x4xf32>
    %35 = vector.extract_strided_slice %15 {offsets = [0, 52], sizes = [8, 4], strides = [1, 1]} : vector<16x64xf32> to vector<8x4xf32>
    %36 = vector.extract_strided_slice %15 {offsets = [0, 24], sizes = [8, 4], strides = [1, 1]} : vector<16x64xf32> to vector<8x4xf32>
    %37 = vector.extract_strided_slice %15 {offsets = [0, 56], sizes = [8, 4], strides = [1, 1]} : vector<16x64xf32> to vector<8x4xf32>
    %38 = vector.extract_strided_slice %15 {offsets = [0, 28], sizes = [8, 4], strides = [1, 1]} : vector<16x64xf32> to vector<8x4xf32>
    %39 = vector.extract_strided_slice %15 {offsets = [0, 60], sizes = [8, 4], strides = [1, 1]} : vector<16x64xf32> to vector<8x4xf32>
    %40 = vector.extract_strided_slice %15 {offsets = [8, 0], sizes = [8, 4], strides = [1, 1]} : vector<16x64xf32> to vector<8x4xf32>
    %41 = vector.extract_strided_slice %15 {offsets = [8, 32], sizes = [8, 4], strides = [1, 1]} : vector<16x64xf32> to vector<8x4xf32>
    %42 = vector.extract_strided_slice %15 {offsets = [8, 4], sizes = [8, 4], strides = [1, 1]} : vector<16x64xf32> to vector<8x4xf32>
    %43 = vector.extract_strided_slice %15 {offsets = [8, 36], sizes = [8, 4], strides = [1, 1]} : vector<16x64xf32> to vector<8x4xf32>
    %44 = vector.extract_strided_slice %15 {offsets = [8, 8], sizes = [8, 4], strides = [1, 1]} : vector<16x64xf32> to vector<8x4xf32>
    %45 = vector.extract_strided_slice %15 {offsets = [8, 40], sizes = [8, 4], strides = [1, 1]} : vector<16x64xf32> to vector<8x4xf32>
    %46 = vector.extract_strided_slice %15 {offsets = [8, 12], sizes = [8, 4], strides = [1, 1]} : vector<16x64xf32> to vector<8x4xf32>
    %47 = vector.extract_strided_slice %15 {offsets = [8, 44], sizes = [8, 4], strides = [1, 1]} : vector<16x64xf32> to vector<8x4xf32>
    %48 = vector.extract_strided_slice %15 {offsets = [8, 16], sizes = [8, 4], strides = [1, 1]} : vector<16x64xf32> to vector<8x4xf32>
    %49 = vector.extract_strided_slice %15 {offsets = [8, 48], sizes = [8, 4], strides = [1, 1]} : vector<16x64xf32> to vector<8x4xf32>
    %50 = vector.extract_strided_slice %15 {offsets = [8, 20], sizes = [8, 4], strides = [1, 1]} : vector<16x64xf32> to vector<8x4xf32>
    %51 = vector.extract_strided_slice %15 {offsets = [8, 52], sizes = [8, 4], strides = [1, 1]} : vector<16x64xf32> to vector<8x4xf32>
    %52 = vector.extract_strided_slice %15 {offsets = [8, 24], sizes = [8, 4], strides = [1, 1]} : vector<16x64xf32> to vector<8x4xf32>
    %53 = vector.extract_strided_slice %15 {offsets = [8, 56], sizes = [8, 4], strides = [1, 1]} : vector<16x64xf32> to vector<8x4xf32>
    %54 = vector.extract_strided_slice %15 {offsets = [8, 28], sizes = [8, 4], strides = [1, 1]} : vector<16x64xf32> to vector<8x4xf32>
    %55 = vector.extract_strided_slice %15 {offsets = [8, 60], sizes = [8, 4], strides = [1, 1]} : vector<16x64xf32> to vector<8x4xf32>
    %56 = vector.shape_cast %16 : vector<8x4xf32> to vector<1x8x4xf32>
    %57 = vector.shape_cast %17 : vector<8x4xf32> to vector<1x8x4xf32>
    %58 = vector.shape_cast %18 : vector<8x4xf32> to vector<1x8x4xf32>
    %59 = vector.shape_cast %19 : vector<8x4xf32> to vector<1x8x4xf32>
    %60 = vector.shape_cast %20 : vector<8x4xf32> to vector<1x8x4xf32>
    %61 = vector.shape_cast %21 : vector<8x4xf32> to vector<1x8x4xf32>
    %62 = vector.shape_cast %22 : vector<8x4xf32> to vector<1x8x4xf32>
    %63 = vector.shape_cast %23 : vector<8x4xf32> to vector<1x8x4xf32>
    %64 = vector.shape_cast %16 : vector<8x4xf32> to vector<1x8x4xf32>
    %65 = vector.shape_cast %17 : vector<8x4xf32> to vector<1x8x4xf32>
    %66 = vector.shape_cast %18 : vector<8x4xf32> to vector<1x8x4xf32>
    %67 = vector.shape_cast %19 : vector<8x4xf32> to vector<1x8x4xf32>
    %68 = vector.shape_cast %20 : vector<8x4xf32> to vector<1x8x4xf32>
    %69 = vector.shape_cast %21 : vector<8x4xf32> to vector<1x8x4xf32>
    %70 = vector.shape_cast %22 : vector<8x4xf32> to vector<1x8x4xf32>
    %71 = vector.shape_cast %23 : vector<8x4xf32> to vector<1x8x4xf32>
    %72 = tpu.concatenate %56, %57, %58, %59, %60, %61, %62, %63, %64, %65, %66, %67, %68, %69, %70, %71 in 0 : vector<1x8x4xf32>, vector<1x8x4xf32>, vector<1x8x4xf32>, vector<1x8x4xf32>, vector<1x8x4xf32>, vector<1x8x4xf32>, vector<1x8x4xf32>, vector<1x8x4xf32>, vector<1x8x4xf32>, vector<1x8x4xf32>, vector<1x8x4xf32>, vector<1x8x4xf32>, vector<1x8x4xf32>, vector<1x8x4xf32>, vector<1x8x4xf32>, vector<1x8x4xf32> -> vector<16x8x4xf32>
    %73 = arith.truncf %72 : vector<16x8x4xf32> to vector<16x8x4xbf16>
    %74 = vector.shape_cast %24 : vector<8x4xf32> to vector<1x8x4xf32>
    %75 = vector.shape_cast %26 : vector<8x4xf32> to vector<1x8x4xf32>
    %76 = vector.shape_cast %28 : vector<8x4xf32> to vector<1x8x4xf32>
    %77 = vector.shape_cast %30 : vector<8x4xf32> to vector<1x8x4xf32>
    %78 = vector.shape_cast %32 : vector<8x4xf32> to vector<1x8x4xf32>
    %79 = vector.shape_cast %34 : vector<8x4xf32> to vector<1x8x4xf32>
    %80 = vector.shape_cast %36 : vector<8x4xf32> to vector<1x8x4xf32>
    %81 = vector.shape_cast %38 : vector<8x4xf32> to vector<1x8x4xf32>
    %82 = vector.shape_cast %40 : vector<8x4xf32> to vector<1x8x4xf32>
    %83 = vector.shape_cast %42 : vector<8x4xf32> to vector<1x8x4xf32>
    %84 = vector.shape_cast %44 : vector<8x4xf32> to vector<1x8x4xf32>
    %85 = vector.shape_cast %46 : vector<8x4xf32> to vector<1x8x4xf32>
    %86 = vector.shape_cast %48 : vector<8x4xf32> to vector<1x8x4xf32>
    %87 = vector.shape_cast %50 : vector<8x4xf32> to vector<1x8x4xf32>
    %88 = vector.shape_cast %52 : vector<8x4xf32> to vector<1x8x4xf32>
    %89 = vector.shape_cast %54 : vector<8x4xf32> to vector<1x8x4xf32>
    %90 = tpu.concatenate %74, %75, %76, %77, %78, %79, %80, %81, %82, %83, %84, %85, %86, %87, %88, %89 in 0 : vector<1x8x4xf32>, vector<1x8x4xf32>, vector<1x8x4xf32>, vector<1x8x4xf32>, vector<1x8x4xf32>, vector<1x8x4xf32>, vector<1x8x4xf32>, vector<1x8x4xf32>, vector<1x8x4xf32>, vector<1x8x4xf32>, vector<1x8x4xf32>, vector<1x8x4xf32>, vector<1x8x4xf32>, vector<1x8x4xf32>, vector<1x8x4xf32>, vector<1x8x4xf32> -> vector<16x8x4xf32>
    %91 = arith.truncf %90 : vector<16x8x4xf32> to vector<16x8x4xbf16>
    %92 = vector.shape_cast %25 : vector<8x4xf32> to vector<1x8x4xf32>
    %93 = vector.shape_cast %27 : vector<8x4xf32> to vector<1x8x4xf32>
    %94 = vector.shape_cast %29 : vector<8x4xf32> to vector<1x8x4xf32>
    %95 = vector.shape_cast %31 : vector<8x4xf32> to vector<1x8x4xf32>
    %96 = vector.shape_cast %33 : vector<8x4xf32> to vector<1x8x4xf32>
    %97 = vector.shape_cast %35 : vector<8x4xf32> to vector<1x8x4xf32>
    %98 = vector.shape_cast %37 : vector<8x4xf32> to vector<1x8x4xf32>
    %99 = vector.shape_cast %39 : vector<8x4xf32> to vector<1x8x4xf32>
    %100 = vector.shape_cast %41 : vector<8x4xf32> to vector<1x8x4xf32>
    %101 = vector.shape_cast %43 : vector<8x4xf32> to vector<1x8x4xf32>
    %102 = vector.shape_cast %45 : vector<8x4xf32> to vector<1x8x4xf32>
    %103 = vector.shape_cast %47 : vector<8x4xf32> to vector<1x8x4xf32>
    %104 = vector.shape_cast %49 : vector<8x4xf32> to vector<1x8x4xf32>
    %105 = vector.shape_cast %51 : vector<8x4xf32> to vector<1x8x4xf32>
    %106 = vector.shape_cast %53 : vector<8x4xf32> to vector<1x8x4xf32>
    %107 = vector.shape_cast %55 : vector<8x4xf32> to vector<1x8x4xf32>
    %108 = tpu.concatenate %92, %93, %94, %95, %96, %97, %98, %99, %100, %101, %102, %103, %104, %105, %106, %107 in 0 : vector<1x8x4xf32>, vector<1x8x4xf32>, vector<1x8x4xf32>, vector<1x8x4xf32>, vector<1x8x4xf32>, vector<1x8x4xf32>, vector<1x8x4xf32>, vector<1x8x4xf32>, vector<1x8x4xf32>, vector<1x8x4xf32>, vector<1x8x4xf32>, vector<1x8x4xf32>, vector<1x8x4xf32>, vector<1x8x4xf32>, vector<1x8x4xf32>, vector<1x8x4xf32> -> vector<16x8x4xf32>
    %109 = arith.truncf %108 : vector<16x8x4xf32> to vector<16x8x4xbf16>
    "tpu.trace_start"() <{level = 10 : i32, message = "gqd,gkd->gqk"}> : () -> ()
    %cst_14 = arith.constant dense<0.000000e+00> : vector<16x8x8xf32>
    %110 = tpu.matmul %73, %91, %cst_14 {dimension_numbers = #tpu.dot_dimension_numbers<[2], [2], [1], [1], [0, 0, 0, 1, 1, 1], [0], [0]>} : vector<16x8x4xbf16>, vector<16x8x4xbf16>, vector<16x8x8xf32> -> vector<16x8x8xf32>
    "tpu.trace_stop"() : () -> ()
    %cst_15 = arith.constant dense<0xFF800000> : vector<16x8xf32>
    %111 = vector.multi_reduction <maximumf>, %110, %cst_15 [2] : vector<16x8x8xf32> to vector<16x8xf32>
    %112 = vector.shape_cast %111 : vector<16x8xf32> to vector<16x8x1xf32>
    %113 = vector.broadcast %112 : vector<16x8x1xf32> to vector<16x8x8xf32>
    %114 = arith.subf %110, %113 : vector<16x8x8xf32>
    %115 = math.exp %114 : vector<16x8x8xf32>
    %cst_16 = arith.constant dense<0.000000e+00> : vector<16x8xf32>
    %116 = vector.multi_reduction <add>, %115, %cst_16 [2] : vector<16x8x8xf32> to vector<16x8xf32>
    %117 = vector.shape_cast %116 : vector<16x8xf32> to vector<16x8x1xf32>
    %118 = tpu.reciprocal %117 : vector<16x8x1xf32> -> vector<16x8x1xf32>
    %119 = vector.broadcast %118 : vector<16x8x1xf32> to vector<16x8x8xf32>
    %120 = arith.mulf %115, %119 : vector<16x8x8xf32>
    %121 = arith.truncf %120 : vector<16x8x8xf32> to vector<16x8x8xbf16>
    "tpu.trace_start"() <{level = 10 : i32, message = "gqk,gkd->gqd"}> : () -> ()
    %cst_17 = arith.constant dense<0.000000e+00> : vector<16x8x4xf32>
    %122 = tpu.matmul %121, %109, %cst_17 {dimension_numbers = #tpu.dot_dimension_numbers<[2], [1], [1], [2], [0, 0, 0, 1, 1, 2], [0], [0]>} : vector<16x8x8xbf16>, vector<16x8x4xbf16>, vector<16x8x4xf32> -> vector<16x8x4xf32>
    "tpu.trace_stop"() : () -> ()
    %123 = vector.extract_strided_slice %122 {offsets = [0, 0, 0], sizes = [1, 8, 4], strides = [1, 1, 1]} : vector<16x8x4xf32> to vector<1x8x4xf32>
    %124 = vector.shape_cast %123 : vector<1x8x4xf32> to vector<8x4xf32>
    %125 = vector.extract_strided_slice %122 {offsets = [1, 0, 0], sizes = [1, 8, 4], strides = [1, 1, 1]} : vector<16x8x4xf32> to vector<1x8x4xf32>
    %126 = vector.shape_cast %125 : vector<1x8x4xf32> to vector<8x4xf32>
    %127 = vector.extract_strided_slice %122 {offsets = [2, 0, 0], sizes = [1, 8, 4], strides = [1, 1, 1]} : vector<16x8x4xf32> to vector<1x8x4xf32>
    %128 = vector.shape_cast %127 : vector<1x8x4xf32> to vector<8x4xf32>
    %129 = vector.extract_strided_slice %122 {offsets = [3, 0, 0], sizes = [1, 8, 4], strides = [1, 1, 1]} : vector<16x8x4xf32> to vector<1x8x4xf32>
    %130 = vector.shape_cast %129 : vector<1x8x4xf32> to vector<8x4xf32>
    %131 = vector.extract_strided_slice %122 {offsets = [4, 0, 0], sizes = [1, 8, 4], strides = [1, 1, 1]} : vector<16x8x4xf32> to vector<1x8x4xf32>
    %132 = vector.shape_cast %131 : vector<1x8x4xf32> to vector<8x4xf32>
    %133 = vector.extract_strided_slice %122 {offsets = [5, 0, 0], sizes = [1, 8, 4], strides = [1, 1, 1]} : vector<16x8x4xf32> to vector<1x8x4xf32>
    %134 = vector.shape_cast %133 : vector<1x8x4xf32> to vector<8x4xf32>
    %135 = vector.extract_strided_slice %122 {offsets = [6, 0, 0], sizes = [1, 8, 4], strides = [1, 1, 1]} : vector<16x8x4xf32> to vector<1x8x4xf32>
    %136 = vector.shape_cast %135 : vector<1x8x4xf32> to vector<8x4xf32>
    %137 = vector.extract_strided_slice %122 {offsets = [7, 0, 0], sizes = [1, 8, 4], strides = [1, 1, 1]} : vector<16x8x4xf32> to vector<1x8x4xf32>
    %138 = vector.shape_cast %137 : vector<1x8x4xf32> to vector<8x4xf32>
    %139 = tpu.concatenate %124, %126, %128, %130, %132, %134, %136, %138 in 1 : vector<8x4xf32>, vector<8x4xf32>, vector<8x4xf32>, vector<8x4xf32>, vector<8x4xf32>, vector<8x4xf32>, vector<8x4xf32>, vector<8x4xf32> -> vector<8x32xf32>
    %140 = vector.extract_strided_slice %122 {offsets = [8, 0, 0], sizes = [1, 8, 4], strides = [1, 1, 1]} : vector<16x8x4xf32> to vector<1x8x4xf32>
    %141 = vector.shape_cast %140 : vector<1x8x4xf32> to vector<8x4xf32>
    %142 = vector.extract_strided_slice %122 {offsets = [9, 0, 0], sizes = [1, 8, 4], strides = [1, 1, 1]} : vector<16x8x4xf32> to vector<1x8x4xf32>
    %143 = vector.shape_cast %142 : vector<1x8x4xf32> to vector<8x4xf32>
    %144 = vector.extract_strided_slice %122 {offsets = [10, 0, 0], sizes = [1, 8, 4], strides = [1, 1, 1]} : vector<16x8x4xf32> to vector<1x8x4xf32>
    %145 = vector.shape_cast %144 : vector<1x8x4xf32> to vector<8x4xf32>
    %146 = vector.extract_strided_slice %122 {offsets = [11, 0, 0], sizes = [1, 8, 4], strides = [1, 1, 1]} : vector<16x8x4xf32> to vector<1x8x4xf32>
    %147 = vector.shape_cast %146 : vector<1x8x4xf32> to vector<8x4xf32>
    %148 = vector.extract_strided_slice %122 {offsets = [12, 0, 0], sizes = [1, 8, 4], strides = [1, 1, 1]} : vector<16x8x4xf32> to vector<1x8x4xf32>
    %149 = vector.shape_cast %148 : vector<1x8x4xf32> to vector<8x4xf32>
    %150 = vector.extract_strided_slice %122 {offsets = [13, 0, 0], sizes = [1, 8, 4], strides = [1, 1, 1]} : vector<16x8x4xf32> to vector<1x8x4xf32>
    %151 = vector.shape_cast %150 : vector<1x8x4xf32> to vector<8x4xf32>
    %152 = vector.extract_strided_slice %122 {offsets = [14, 0, 0], sizes = [1, 8, 4], strides = [1, 1, 1]} : vector<16x8x4xf32> to vector<1x8x4xf32>
    %153 = vector.shape_cast %152 : vector<1x8x4xf32> to vector<8x4xf32>
    %154 = vector.extract_strided_slice %122 {offsets = [15, 0, 0], sizes = [1, 8, 4], strides = [1, 1, 1]} : vector<16x8x4xf32> to vector<1x8x4xf32>
    %155 = vector.shape_cast %154 : vector<1x8x4xf32> to vector<8x4xf32>
    %156 = tpu.concatenate %141, %143, %145, %147, %149, %151, %153, %155 in 1 : vector<8x4xf32>, vector<8x4xf32>, vector<8x4xf32>, vector<8x4xf32>, vector<8x4xf32>, vector<8x4xf32>, vector<8x4xf32>, vector<8x4xf32> -> vector<8x32xf32>
    %157 = tpu.concatenate %139, %156 in 0 : vector<8x32xf32>, vector<8x32xf32> -> vector<16x32xf32>
    %158 = arith.truncf %157 : vector<16x32xf32> to vector<16x32xbf16>
    %c0_18 = arith.constant 0 : index
    %c0_19 = arith.constant 0 : index
    %159 = vector.load %arg7[%c0_18, %c0_19] : memref<32x32xbf16, #tpu.memory_space<vmem>>, vector<32x32xbf16>
    %cst_20 = arith.constant dense<0.000000e+00> : vector<16x32xf32>
    %160 = tpu.matmul %158, %159, %cst_20 {dimension_numbers = #tpu.dot_dimension_numbers<[1], [0], [0], [1], [0, 0, 1, 1], [], []>} : vector<16x32xbf16>, vector<32x32xbf16>, vector<16x32xf32> -> vector<16x32xf32>
    %c0_21 = arith.constant 0 : index
    %c0_22 = arith.constant 0 : index
    %161 = vector.load %arg8[%c0_21, %c0_22] : memref<1x32xf32, #tpu.memory_space<vmem>>, vector<1x32xf32>
    %162 = vector.broadcast %161 : vector<1x32xf32> to vector<16x32xf32>
    %163 = arith.addf %160, %162 : vector<16x32xf32>
    %164 = vector.extract_strided_slice %163 {offsets = [0, 0], sizes = [8, 32], strides = [1, 1]} : vector<16x32xf32> to vector<8x32xf32>
    %165 = vector.extract_strided_slice %163 {offsets = [8, 0], sizes = [8, 32], strides = [1, 1]} : vector<16x32xf32> to vector<8x32xf32>
    %166 = arith.addf %164, %1 : vector<8x32xf32>
    %cst_23 = arith.constant dense<0.000000e+00> : vector<8xf32>
    %167 = vector.multi_reduction <add>, %166, %cst_23 [1] : vector<8x32xf32> to vector<8xf32>
    %168 = vector.shape_cast %167 : vector<8xf32> to vector<8x1xf32>
    %cst_24 = arith.constant 3.200000e+01 : f32
    %169 = vector.broadcast %cst_24 : f32 to vector<8x1xf32>
    %170 = arith.divf %168, %169 : vector<8x1xf32>
    %171 = arith.mulf %166, %166 : vector<8x32xf32>
    %cst_25 = arith.constant dense<0.000000e+00> : vector<8xf32>
    %172 = vector.multi_reduction <add>, %171, %cst_25 [1] : vector<8x32xf32> to vector<8xf32>
    %173 = vector.shape_cast %172 : vector<8xf32> to vector<8x1xf32>
    %cst_26 = arith.constant 3.200000e+01 : f32
    %174 = vector.broadcast %cst_26 : f32 to vector<8x1xf32>
    %175 = arith.divf %173, %174 : vector<8x1xf32>
    %176 = arith.mulf %170, %170 : vector<8x1xf32>
    %177 = arith.subf %175, %176 : vector<8x1xf32>
    %cst_27 = arith.constant 0.000000e+00 : f32
    %178 = vector.broadcast %cst_27 : f32 to vector<8x1xf32>
    %179 = arith.maximumf %177, %178 : vector<8x1xf32>
    %180 = vector.broadcast %170 : vector<8x1xf32> to vector<8x32xf32>
    %181 = arith.subf %166, %180 : vector<8x32xf32>
    %cst_28 = arith.constant 9.99999974E-6 : f32
    %182 = vector.broadcast %cst_28 : f32 to vector<8x1xf32>
    %183 = arith.addf %179, %182 : vector<8x1xf32>
    %184 = math.rsqrt %183 : vector<8x1xf32>
    %185 = vector.broadcast %184 : vector<8x1xf32> to vector<8x32xf32>
    %186 = arith.mulf %181, %185 : vector<8x32xf32>
    %187 = arith.addf %165, %1 : vector<8x32xf32>
    %cst_29 = arith.constant dense<0.000000e+00> : vector<8xf32>
    %188 = vector.multi_reduction <add>, %187, %cst_29 [1] : vector<8x32xf32> to vector<8xf32>
    %189 = vector.shape_cast %188 : vector<8xf32> to vector<8x1xf32>
    %cst_30 = arith.constant 3.200000e+01 : f32
    %190 = vector.broadcast %cst_30 : f32 to vector<8x1xf32>
    %191 = arith.divf %189, %190 : vector<8x1xf32>
    %192 = arith.mulf %187, %187 : vector<8x32xf32>
    %cst_31 = arith.constant dense<0.000000e+00> : vector<8xf32>
    %193 = vector.multi_reduction <add>, %192, %cst_31 [1] : vector<8x32xf32> to vector<8xf32>
    %194 = vector.shape_cast %193 : vector<8xf32> to vector<8x1xf32>
    %cst_32 = arith.constant 3.200000e+01 : f32
    %195 = vector.broadcast %cst_32 : f32 to vector<8x1xf32>
    %196 = arith.divf %194, %195 : vector<8x1xf32>
    %197 = arith.mulf %191, %191 : vector<8x1xf32>
    %198 = arith.subf %196, %197 : vector<8x1xf32>
    %cst_33 = arith.constant 0.000000e+00 : f32
    %199 = vector.broadcast %cst_33 : f32 to vector<8x1xf32>
    %200 = arith.maximumf %198, %199 : vector<8x1xf32>
    %201 = vector.broadcast %191 : vector<8x1xf32> to vector<8x32xf32>
    %202 = arith.subf %187, %201 : vector<8x32xf32>
    %cst_34 = arith.constant 9.99999974E-6 : f32
    %203 = vector.broadcast %cst_34 : f32 to vector<8x1xf32>
    %204 = arith.addf %200, %203 : vector<8x1xf32>
    %205 = math.rsqrt %204 : vector<8x1xf32>
    %206 = vector.broadcast %205 : vector<8x1xf32> to vector<8x32xf32>
    %207 = arith.mulf %202, %206 : vector<8x32xf32>
    %208 = arith.truncf %186 : vector<8x32xf32> to vector<8x32xbf16>
    %c0_35 = arith.constant 0 : index
    %c0_36 = arith.constant 0 : index
    %209 = vector.load %arg9[%c0_35, %c0_36] : memref<32x32xbf16, #tpu.memory_space<vmem>>, vector<32x32xbf16>
    %cst_37 = arith.constant dense<0.000000e+00> : vector<8x32xf32>
    %210 = tpu.matmul %208, %209, %cst_37 {dimension_numbers = #tpu.dot_dimension_numbers<[1], [0], [0], [1], [0, 0, 1, 1], [], []>} : vector<8x32xbf16>, vector<32x32xbf16>, vector<8x32xf32> -> vector<8x32xf32>
    %211 = arith.truncf %207 : vector<8x32xf32> to vector<8x32xbf16>
    %c0_38 = arith.constant 0 : index
    %c0_39 = arith.constant 0 : index
    %212 = vector.load %arg10[%c0_38, %c0_39] : memref<32x32xbf16, #tpu.memory_space<vmem>>, vector<32x32xbf16>
    %cst_40 = arith.constant dense<0.000000e+00> : vector<8x32xf32>
    %213 = tpu.matmul %211, %212, %cst_40 {dimension_numbers = #tpu.dot_dimension_numbers<[1], [0], [0], [1], [0, 0, 1, 1], [], []>} : vector<8x32xbf16>, vector<32x32xbf16>, vector<8x32xf32> -> vector<8x32xf32>
    %214 = arith.addf %210, %213 : vector<8x32xf32>
    %c0_41 = arith.constant 0 : index
    %c0_42 = arith.constant 0 : index
    %215 = vector.load %arg11[%c0_41, %c0_42] : memref<1x32xf32, #tpu.memory_space<vmem>>, vector<1x32xf32>
    %216 = vector.broadcast %215 : vector<1x32xf32> to vector<8x32xf32>
    %217 = arith.addf %214, %216 : vector<8x32xf32>
    %cst_43 = arith.constant 0.000000e+00 : f32
    %218 = vector.broadcast %cst_43 : f32 to vector<8x32xf32>
    %219 = arith.maximumf %217, %218 : vector<8x32xf32>
    %220 = arith.addf %219, %1 : vector<8x32xf32>
    %cst_44 = arith.constant dense<0.000000e+00> : vector<8xf32>
    %221 = vector.multi_reduction <add>, %220, %cst_44 [1] : vector<8x32xf32> to vector<8xf32>
    %222 = vector.shape_cast %221 : vector<8xf32> to vector<8x1xf32>
    %cst_45 = arith.constant 3.200000e+01 : f32
    %223 = vector.broadcast %cst_45 : f32 to vector<8x1xf32>
    %224 = arith.divf %222, %223 : vector<8x1xf32>
    %225 = arith.mulf %220, %220 : vector<8x32xf32>
    %cst_46 = arith.constant dense<0.000000e+00> : vector<8xf32>
    %226 = vector.multi_reduction <add>, %225, %cst_46 [1] : vector<8x32xf32> to vector<8xf32>
    %227 = vector.shape_cast %226 : vector<8xf32> to vector<8x1xf32>
    %cst_47 = arith.constant 3.200000e+01 : f32
    %228 = vector.broadcast %cst_47 : f32 to vector<8x1xf32>
    %229 = arith.divf %227, %228 : vector<8x1xf32>
    %230 = arith.mulf %224, %224 : vector<8x1xf32>
    %231 = arith.subf %229, %230 : vector<8x1xf32>
    %cst_48 = arith.constant 0.000000e+00 : f32
    %232 = vector.broadcast %cst_48 : f32 to vector<8x1xf32>
    %233 = arith.maximumf %231, %232 : vector<8x1xf32>
    %234 = vector.broadcast %224 : vector<8x1xf32> to vector<8x32xf32>
    %235 = arith.subf %220, %234 : vector<8x32xf32>
    %cst_49 = arith.constant 9.99999974E-6 : f32
    %236 = vector.broadcast %cst_49 : f32 to vector<8x1xf32>
    %237 = arith.addf %233, %236 : vector<8x1xf32>
    %238 = math.rsqrt %237 : vector<8x1xf32>
    %239 = vector.broadcast %238 : vector<8x1xf32> to vector<8x32xf32>
    %240 = arith.mulf %235, %239 : vector<8x32xf32>
    %c0_50 = arith.constant 0 : index
    %c0_51 = arith.constant 0 : index
    %c0_52 = arith.constant 0 : index
    %241 = vector.load %arg12[%c0_50, %c0_51, %c0_52] : memref<1x8x32xf32, #tpu.memory_space<vmem>>, vector<1x8x32xf32>
    %242 = vector.shape_cast %241 : vector<1x8x32xf32> to vector<8x32xf32>
    %243 = vector.shape_cast %240 : vector<8x32xf32> to vector<1x8x32xf32>
    tpu.vector_store %arg12[%c0_50, %c0_51, %c0_52], %243 {strides = array<i32>} : memref<1x8x32xf32, #tpu.memory_space<vmem>>, vector<1x8x32xf32>,
    return
  }
  func.func @transform_0(%arg0: i32) -> (i32, i32, i32) {
    %c0_i32 = arith.constant 0 : i32
    %c0_i32_0 = arith.constant 0 : i32
    %c0_i32_1 = arith.constant 0 : i32
    return %arg0, %c0_i32, %c0_i32_0 : i32, i32, i32
  }
  func.func @transform_1(%arg0: i32) -> (i32, i32, i32) {
    %c0_i32 = arith.constant 0 : i32
    %c0_i32_0 = arith.constant 0 : i32
    %c0_i32_1 = arith.constant 0 : i32
    return %arg0, %c0_i32, %c0_i32_0 : i32, i32, i32
  }
  func.func @transform_2(%arg0: i32) -> (i32, i32) {
    %c0_i32 = arith.constant 0 : i32
    %c0_i32_0 = arith.constant 0 : i32
    %c0_i32_1 = arith.constant 0 : i32
    return %c0_i32, %c0_i32_0 : i32, i32
  }
  func.func @transform_3(%arg0: i32) -> (i32, i32) {
    %c0_i32 = arith.constant 0 : i32
    %c0_i32_0 = arith.constant 0 : i32
    %c0_i32_1 = arith.constant 0 : i32
    return %c0_i32, %c0_i32_0 : i32, i32
  }
  func.func @transform_4(%arg0: i32) -> (i32, i32) {
    %c0_i32 = arith.constant 0 : i32
    %c0_i32_0 = arith.constant 0 : i32
    %c0_i32_1 = arith.constant 0 : i32
    return %c0_i32, %c0_i32_0 : i32, i32
  }
  func.func @transform_5(%arg0: i32) -> (i32, i32) {
    %c0_i32 = arith.constant 0 : i32
    %c0_i32_0 = arith.constant 0 : i32
    %c0_i32_1 = arith.constant 0 : i32
    return %c0_i32, %c0_i32_0 : i32, i32
  }
  func.func @transform_6(%arg0: i32) -> (i32, i32) {
    %c0_i32 = arith.constant 0 : i32
    %c0_i32_0 = arith.constant 0 : i32
    %c0_i32_1 = arith.constant 0 : i32
    return %c0_i32, %c0_i32_0 : i32, i32
  }
  func.func @transform_7(%arg0: i32) -> (i32, i32) {
    %c0_i32 = arith.constant 0 : i32
    %c0_i32_0 = arith.constant 0 : i32
    %c0_i32_1 = arith.constant 0 : i32
    return %c0_i32, %c0_i32_0 : i32, i32
  }
  func.func @transform_8(%arg0: i32) -> (i32, i32) {
    %c0_i32 = arith.constant 0 : i32
    %c0_i32_0 = arith.constant 0 : i32
    %c0_i32_1 = arith.constant 0 : i32
    return %c0_i32, %c0_i32_0 : i32, i32
  }
  func.func @transform_9(%arg0: i32) -> (i32, i32) {
    %c0_i32 = arith.constant 0 : i32
    %c0_i32_0 = arith.constant 0 : i32
    %c0_i32_1 = arith.constant 0 : i32
    return %c0_i32, %c0_i32_0 : i32, i32
  }
  func.func @transform_10(%arg0: i32) -> (i32, i32) {
    %c0_i32 = arith.constant 0 : i32
    %c0_i32_0 = arith.constant 0 : i32
    %c0_i32_1 = arith.constant 0 : i32
    return %c0_i32, %c0_i32_0 : i32, i32
  }
  func.func @transform_11(%arg0: i32) -> (i32, i32, i32) {
    %c0_i32 = arith.constant 0 : i32
    %c0_i32_0 = arith.constant 0 : i32
    %c0_i32_1 = arith.constant 0 : i32
    return %arg0, %c0_i32, %c0_i32_0 : i32, i32, i32
  }
}

</mosaic_0001>

<bundles_post_ra>
// kernel: utility_block.1
= control target key start
LH: loop header
LB: loop body
LE: loop exit
PB: predicated region body
PF: predicated region fallthrough
CT: control target
= control target key end

     0   :  { %16 = vsyncpa [#allocation3], 0  ;;  %s2991_s0 = inlined_call_operand.vmem [shape: f32[2,8,32], index: 0, kind: input, shape index: {}]   ;;  %s2992_s1 = inlined_call_operand.vmem [shape: f32[2,16,32], index: 1, kind: input, shape index: {}]   ;;  %s2993_s2 = inlined_call_operand.vmem [shape: bf16[32,32], index: 2, kind: input, shape index: {}]   ;;  %s2994_s3 = inlined_call_operand.vmem [shape: bf16[32,64], index: 3, kind: input, shape index: {}]   ;;  %s2995_s4 = inlined_call_operand.vmem [shape: f32[1,32], index: 4, kind: input, shape index: {}]   ;;  %s2996_s5 = inlined_call_operand.vmem [shape: f32[1,64], index: 5, kind: input, shape index: {}]   ;;  %s2997_s6 = inlined_call_operand.vmem [shape: bf16[32,32], index: 6, kind: input, shape index: {}]   ;;  %s2998_s7 = inlined_call_operand.vmem [shape: f32[1,32], index: 7, kind: input, shape index: {}]   ;;  %s2999_s8 = inlined_call_operand.vmem [shape: bf16[32,32], index: 8, kind: input, shape index: {}]   ;;  %s3000_s9 = inlined_call_operand.vmem [shape: bf16[32,32], index: 9, kind: input, shape index: {}]   ;;  %s3001_s10 = inlined_call_operand.vmem [shape: f32[1,32], index: 10, kind: input, shape index: {}]   ;;  %s3002_s11 = inlined_call_operand.hbm [shape: f32[2,8,32], index: 11, kind: output, shape index: {}]  }
   0x1   :  { %18 = vsyncpa [#allocation3 + $0x1], 0  ;;  %s2419_s17 = smov 0   ;;  %s2421_s18 = smov 0  }
   0x2   :  { %s2423_s19 = smov 0   ;;  %s2425_s20 = smov 0  }
   0x3 LB: > { %3004 = sst [smem:[#allocation5_spill]] %s2337_s19  ;;  %s2440_s21 = sadd.s32 4294967295, %s2341_s20   ;;  %s2341_s20 = sphi %s2425_s20, %s3016_s20   ;;  %s2337_s19 = sphi %s2423_s19, %s3013_s19   ;;  %s2333_s18 = sphi %s2421_s18, %s3015_s18   ;;  %s2329_s17 = sphi %s2419_s17, %s3014_s17  }
   0x4   : > { %s1997_s22 = sadd.s32 4294967294, %s2341_s20   ;;  %s2444_s23 = sadd.s32 1, %s2341_s20  }
   0x5   : > { %s272_s24 = sadd.s32 1, %s2337_s19  ;;  %s269_s25 = ssub.s32 %s2341_s20, %s2444_s23 }
   0x6   : > { %p282_p0 = scmp.ne.s32.totalorder %s2337_s19, %s2333_s18  ;;  %p270_p1 = scmp.eq.s32.totalorder %s269_s25, 0 }
   0x7   : > { %p283_p2 = scmp.eq.s32.totalorder %s2440_s21, 1  ;;  %p288_p3 = scmp.ne.s32.totalorder %s2333_s18, %s2329_s17 }
   0x8   : > { %p289_p4 = scmp.eq.s32.totalorder %s1997_s22, 1  ;;  %p2000_p7 = scmp.ge.s32.totalorder %s2341_s20, 1 }
   0x9   : > { %s2455_s26 = scalar_select %p270_p1, %s2337_s19, %s272_s24  }
   0xa   : > { %p2457_p5 = por %p283_p2, %p282_p0  ;;  %p2461_p6 = por %p289_p4, %p288_p3 }
   0xb   : > { %3005 = sst [smem:[#allocation6_spill]] %s2455_s26  ;;  %p349_p8 = scmp.lt.s32.totalorder %s2341_s20, 3 }
   0xd   : > { %p350_p9 = pnand %p2000_p7, %p349_p8 }
   0xe   : > { %p393_p10 = scmp.lt.s32.totalorder (!%p350_p9), %s2440_s21, 1  ;;  %s2346_s30 = smov (!%p350_p9), 112  }
   0xf   : > { %353 = sbr.rel (%p350_p9) target bundleno = 1678 (0x68e), region = 64  ;;  %s2347_s12 = smov (!%p350_p9), 120  }
  0x10   : > { %s2348_s13 = smov (!%p350_p9), 100   ;;  %s2350_s26 = smov (!%p350_p9), 96  }
  0x11   : > { %s2351_s15 = smov (!%p350_p9), 8   ;;  %s2352_s16 = smov (!%p350_p9), 4  }
  0x12   : > { %s2353_s22 = smov (!%p350_p9), 12  }
  0x14   : > { %v2088_v0 = vld [vmem:[%s2993_s2 + $0x8] sm:$0xff]  ;;  %v2087_v2 = vld [vmem:[%s2993_s2] sm:$0xff]  ;;  %s394_s24 = scalar_select %p393_p10, %s2440_s21, 1  ;;  %vm427_vm0 = vcmask 261120   ;;  %vm572_vm1 = vcmask 31744   ;;  %vm1262_vm2 = vcmask 1043456  }
  0x15   : > { %v2090_v1 = vld [vmem:[%s2994_s3 + $0x8] sm:$0xff]  ;;  %437 = vmatpush.bf16.msra.mxu0 %v2088_v0  ;;  %v2089_v3 = vld [vmem:[%s2994_s3] sm:$0xff]  ;;  %vm853_vm3 = vcmask 64512  }
  0x16   : > { %474 = vmatpush.bf16.msra.mxu1 %v2090_v1  ;;  %s2002_s25 = sshll.u32 %s394_s24, 3  ;;  %s2086_s29 = sshll.u32 %s394_s24, 4  ;;  %v2202_v9 = vld [vmem:[%s2995_s4] ss:$0 sm:$0xff] }
  0x17   : > { %s2484_s19 = scalar_lea.vmem %s2991_s0, %s2002_s25  ;;  %s401_s14 = scalar_lea.vmem %s2992_s1, %s2086_s29  ;;  %v2203_v10 = vld [vmem:[%s2996_s5] ss:$0 sm:$0xff] }
  0x18   : > { %v403_v4 = vld [vmem:[%s2484_s19] sm:$0xff]  ;;  %v405_v6 = vld [vmem:[%s401_s14 + $0x8] sm:$0xff]  ;;  %s2343_s24 = smov 108   ;;  %s2344_s25 = smov 116  }
  0x19   : > { %438 = vmatpush.bf16.msra.mxu0 %v2087_v2  ;;  %v404_v5 = vld [vmem:[%s401_s14] sm:$0xff]  ;;  %v406_v7 = vpack.c.bf16 %v403_v4, %v403_v4  ;;  %s2345_s29 = smov 124   ;;  %s2349_s14 = smov 104  }
  0x1a   : > { %475 = vmatpush.bf16.msra.mxu1 %v2089_v3  ;;  %v444_v8 = vpack.c.bf16 %v405_v6, %v404_v5 }
  0x1c   : > { %2013 = vmatmul.msk.bf16.vlgmr.msra.gmra.mxu0 %vm427_vm0, %v406_v7 }
  0x1d   : > { %2022 = vmatmul.msk.bf16.vlgmr.msra.gmra.mxu1 %vm427_vm0, %v444_v8 }
  0x99   : > { %v440_v11 = vpop.f32.mrf.mxu0 }
  0x9a   : > { %v477_v12 = vpop.f32.mrf.mxu1  ;;  %v441_v13 = vadd.f32 %v2202_v9, %v440_v11 }
  0x9b   : > { %v478_v14 = vadd.f32 %v2203_v10, %v477_v12 }
  0x9c   : > { %v2500_v19 = vpack.c.bf16 %v441_v13, %v441_v13 }
  0x9d   : > { %525 = vrot.lane.b32.xlu2 %v478_v14, %s2343_s24  ;;  %v2162_v15 = vpack.i.bf16 %v441_v13, %v478_v14  ;;  %v556_v16 = vpack.c.bf16 %v478_v14, %v478_v14 }
  0x9f   : > { %2163 = vrot.lane.b32.xlu1 %v2162_v15, %s2344_s25  ;;  %2153 = vrot.lane.b32.xlu0 %v2162_v15, %s2345_s29  ;;  %v577_v17 = vsel %vm572_vm1, %v556_v16, 0  ;;  %v1255_v24 = vunpack.c.l.b16 %v556_v16 }
  0xa0   : > { %586 = vmatpush.bf16.xpose.msra.mxu2 %v577_v17 }
  0xa1   : > { %v442_v18 = vpop.f32.mrf.mxu0  ;;  %v1256_v26 = vpack.c.b16 %v1255_v24, %v1255_v24 }
  0xa2   : > { %v479_v20 = vpop.f32.mrf.mxu1 }
  0xa3   : > { %v480_v21 = vadd.f32 %v2203_v10, %v479_v20 }
  0xa5   : > { %492 = vrot.lane.b32.xlu2 %v441_v13, %s2346_s30  ;;  %v564_v22 = vpack.c.bf16 %v480_v21, %v480_v21 }
  0xa7   : > { %522 = vrot.lane.b32.xlu1 %v478_v14, %s2346_s30  ;;  %2158 = vrot.lane.b32.xlu0 %v2162_v15, %s2347_s12  ;;  %v1448_v23 = vunpack.c.l.b16 %v564_v22  ;;  %v726_v60 = vsel %vm572_vm1, %v564_v22, 0 }
  0xa8   : > { %2023 = vmatmul.msk.bf16.vlgmr.msra.gmra.mxu2 %vm572_vm1, %v2500_v19 }
  0xa9   : > { %v1449_v25 = vpack.c.b16 %v1448_v23, %v1448_v23 }
  0xad   : > { %531 = vrot.lane.b32.xlu2 %v478_v14, %s2348_s13 }
  0xaf   : > { %528 = vrot.lane.b32.xlu1 %v478_v14, %s2349_s14  ;;  %495 = vrot.lane.b32.xlu0 %v441_v13, %s2343_s24 }
  0xb5   : > { %501 = vrot.lane.b32.xlu2 %v441_v13, %s2348_s13 }
  0xb7   : > { %498 = vrot.lane.b32.xlu1 %v441_v13, %s2349_s14  ;;  %535 = vrot.lane.b32.xlu0 %v480_v21, %s2345_s29  ;;  %s2356_s29 = smov 20  }
  0xbd   : > { %544 = vrot.lane.b32.xlu2 %v480_v21, %s2346_s30  ;;  %s2357_s30 = smov 28  }
  0xbf   : > { %541 = vrot.lane.b32.xlu1 %v480_v21, %s2344_s25  ;;  %538 = vrot.lane.b32.xlu0 %v480_v21, %s2347_s12  ;;  %s2355_s25 = smov 24  }
  0xc5   : > { %553 = vrot.lane.b32.xlu2 %v480_v21, %s2348_s13 }
  0xc7   : > { %550 = vrot.lane.b32.xlu1 %v480_v21, %s2349_s14  ;;  %547 = vrot.lane.b32.xlu0 %v480_v21, %s2343_s24  ;;  %s2354_s24 = smov 16  }
  0xcd   : > { %1450 = vrot.lane.b32.xlu2 %v1449_v25, %s2350_s26 }
  0xcf   : > { %1257 = vrot.lane.b32.xlu0 %v1256_v26, %s2350_s26 }
  0xf7   : > { %v526_v27 = vpop.permute.xlu2 %525 }
  0xf8   : > { %v561_v34 = vpack.c.bf16 %v526_v27, %v526_v27 }
  0xfa   : > { %v672_v44 = vsel %vm572_vm1, %v561_v34, 0  ;;  %v1376_v8 = vunpack.c.l.b16 %v561_v34 }
  0xfc   : > { %v1377_v13 = vpack.c.b16 %v1376_v8, %v1376_v8 }
  0xff   : > { %v493_v28 = vpop.permute.xlu2 %492 }
 0x100   : > { %v508_v6 = vpack.c.bf16 %v493_v28, %v493_v28 }
 0x107   : > { %v532_v29 = vpop.permute.xlu2 %531 }
 0x108   : > { %v563_v35 = vpack.c.bf16 %v532_v29, %v532_v29 }
 0x10a   : > { %v710_v43 = vsel %vm572_vm1, %v563_v35, 0  ;;  %v1424_v52 = vunpack.c.l.b16 %v563_v35 }
 0x10c   : > { %v1425_v63 = vpack.c.b16 %v1424_v52, %v1424_v52 }
 0x10f   : > { %v2508_v36 = vpop.permute.xlu2 %501 }
 0x110   : > { %v511_v20 = vpack.c.bf16 %v2508_v36, %v2508_v36 }
 0x111   : > { %v2164_v30 = vpop.permute.xlu1 %2163  ;;  %v2154_v31 = vpop.permute.xlu0 %2153 }
 0x112   : > { %v2165_v32 = vunpack.i.l.bf16 %v2164_v30  ;;  %v2155_v33 = vunpack.i.l.bf16 %v2154_v31  ;;  %v2166_v45 = vunpack.i.h.bf16 %v2164_v30  ;;  %v2156_v46 = vunpack.i.h.bf16 %v2154_v31 }
 0x114   : > { %v559_v37 = vpack.c.bf16 %v2165_v32, %v2165_v32  ;;  %v557_v38 = vpack.c.bf16 %v2155_v33, %v2155_v33  ;;  %v2516_v54 = vpack.c.bf16 %v2166_v45, %v2166_v45  ;;  %v2518_v55 = vpack.c.bf16 %v2156_v46, %v2156_v46 }
 0x116   : > { %v1328_v39 = vunpack.c.l.b16 %v559_v37  ;;  %v596_v40 = vsel %vm572_vm1, %v557_v38, 0  ;;  %v1280_v41 = vunpack.c.l.b16 %v557_v38  ;;  %v634_v42 = vsel %vm572_vm1, %v559_v37, 0 }
 0x117   : > { %605 = vmatpush.bf16.xpose.msra.mxu3 %v596_v40  ;;  %643 = vmatpush.bf16.xpose.msrb.mxu1 %v634_v42  ;;  %v545_v58 = vpop.permute.xlu2 %544 }
 0x118   : > { %v1329_v47 = vpack.c.b16 %v1328_v39, %v1328_v39  ;;  %v1281_v48 = vpack.c.b16 %v1280_v41, %v1280_v41  ;;  %v2527_v0 = vpack.c.bf16 %v545_v58, %v545_v58 }
 0x119   : > { %v523_v49 = vpop.permute.xlu1 %522  ;;  %v2159_v50 = vpop.permute.xlu0 %2158 }
 0x11a   : > { %v560_v51 = vpack.c.bf16 %v523_v49, %v523_v49  ;;  %1330 = vrot.lane.b32.xlu2 %v1329_v47, %s2350_s26  ;;  %1282 = vrot.lane.b32.xlu1 %v1281_v48, %s2350_s26  ;;  %v2160_v53 = vunpack.i.l.bf16 %v2159_v50  ;;  %v2161_v2 = vunpack.i.h.bf16 %v2159_v50  ;;  %v790_v9 = vsel %vm572_vm1, %v2527_v0, 0 }
 0x11c   : > { %v1352_v56 = vunpack.c.l.b16 %v560_v51  ;;  %v653_v57 = vsel %vm572_vm1, %v560_v51, 0  ;;  %v558_v59 = vpack.c.bf16 %v2160_v53, %v2160_v53  ;;  %v506_v11 = vpack.c.bf16 %v2161_v2, %v2161_v2 }
 0x11d   : > { %662 = vmatpush.bf16.xpose.msrb.mxu2 %v653_v57 }
 0x11e   : > { %2024 = vmatmul.msk.bf16.vlgmr.msra.gmra.mxu3 %vm572_vm1, %v2518_v55  ;;  %2026 = vmatmul.msk.bf16.vlgmr.msrb.gmra.mxu1 %vm572_vm1, %v2516_v54  ;;  %v1304_v61 = vunpack.c.l.b16 %v558_v59  ;;  %v615_v62 = vsel %vm572_vm1, %v558_v59, 0  ;;  %v1353_v1 = vpack.c.b16 %v1352_v56, %v1352_v56 }
 0x11f   : > { %681 = vmatpush.bf16.xpose.msrb.mxu3 %v672_v44  ;;  %719 = vmatpush.bf16.xpose.msra.mxu1 %v710_v43  ;;  %v554_v23 = vpop.permute.xlu2 %553 }
 0x120   : > { %624 = vmatpush.bf16.xpose.msrb.mxu0 %v615_v62  ;;  %v1305_v5 = vpack.c.b16 %v1304_v61, %v1304_v61  ;;  %v2549_v24 = vpack.c.bf16 %v554_v23, %v554_v23 }
 0x121   : > { %v529_v3 = vpop.permute.xlu1 %528  ;;  %v496_v4 = vpop.permute.xlu0 %495 }
 0x122   : > { %v562_v7 = vpack.c.bf16 %v529_v3, %v529_v3  ;;  %1354 = vrot.lane.b32.xlu2 %v1353_v1, %s2350_s26  ;;  %1426 = vrot.lane.b32.xlu1 %v1425_v63, %s2350_s26  ;;  %v509_v21 = vpack.c.bf16 %v496_v4, %v496_v4  ;;  %v838_v32 = vsel %vm572_vm1, %v2549_v24, 0 }
 0x123   : > { %1306 = vrot.lane.b32.xlu0 %v1305_v5, %s2350_s26 }
 0x124   : > { %v691_v10 = vsel %vm572_vm1, %v562_v7, 0  ;;  %2027 = vmatmul.msk.bf16.vlgmr.msrb.gmra.mxu2 %vm572_vm1, %v508_v6  ;;  %v1400_v12 = vunpack.c.l.b16 %v562_v7 }
 0x125   : > { %735 = vmatpush.bf16.xpose.msra.mxu2 %v726_v60 }
 0x126   : > { %v1401_v14 = vpack.c.b16 %v1400_v12, %v1400_v12 }
 0x127   : > { %2025 = vmatmul.msk.bf16.vlgmr.msrb.gmra.mxu0 %vm572_vm1, %v506_v11  ;;  %v2584_v42 = vpop.permute.xlu2 %1450 }
 0x128   : > { %700 = vmatpush.bf16.xpose.msra.mxu0 %v691_v10 }
 0x129   : > { %v499_v15 = vpop.permute.xlu1 %498  ;;  %v536_v16 = vpop.permute.xlu0 %535 }
 0x12a   : > { %v2537_v17 = vpack.c.bf16 %v536_v16, %v536_v16  ;;  %1378 = vrot.lane.b32.xlu2 %v1377_v13, %s2350_s26  ;;  %v510_v33 = vpack.c.bf16 %v499_v15, %v499_v15 }
 0x12b   : > { %1402 = vrot.lane.b32.xlu0 %v1401_v14, %s2350_s26  ;;  %v2541_v18 = vpop.f32.mrf.mxu2 }
 0x12c   : > { %v742_v22 = vsel %vm572_vm1, %v2537_v17, 0  ;;  %v854_v41 = vsel %vm853_vm3, %v2541_v18, -inf }
 0x12d   : > { %799 = vmatpush.bf16.xpose.msrb.mxu2 %v790_v9  ;;  %751 = vmatpush.bf16.xpose.msra.mxu3 %v742_v22 }
 0x12e   : > { %2028 = vmatmul.msk.bf16.vlgmr.msrb.gmra.mxu3 %vm572_vm1, %v509_v21  ;;  %2030 = vmatmul.msk.bf16.vlgmr.msra.gmra.mxu1 %vm572_vm1, %v511_v20 }
 0x131   : > { %v542_v25 = vpop.permute.xlu1 %541  ;;  %v539_v26 = vpop.permute.xlu0 %538 }
 0x132   : > { %v2551_v27 = vpack.c.bf16 %v542_v25, %v542_v25  ;;  %v2553_v28 = vpack.c.bf16 %v539_v26, %v539_v26 }
 0x133   : > { %v590_v29 = vpop.f32.mrf.mxu2 }
 0x134   : > { %v774_v30 = vsel %vm572_vm1, %v2551_v27, 0  ;;  %v758_v31 = vsel %vm572_vm1, %v2553_v28, 0  ;;  %2031 = vmatmul.msk.bf16.vlgmr.msra.gmra.mxu2 %vm572_vm1, %v2500_v19 }
 0x135   : > { %767 = vmatpush.bf16.xpose.msrb.mxu0 %v758_v31  ;;  %783 = vmatpush.bf16.xpose.msrb.mxu1 %v774_v30 }
 0x137   : > { %2029 = vmatmul.msk.bf16.vlgmr.msra.gmra.mxu0 %vm572_vm1, %v510_v33 }
 0x139   : > { %v551_v34 = vpop.permute.xlu1 %550  ;;  %v548_v35 = vpop.permute.xlu0 %547 }
 0x13a   : > { %v2564_v36 = vpack.c.bf16 %v551_v34, %v551_v34  ;;  %v2566_v37 = vpack.c.bf16 %v548_v35, %v548_v35 }
 0x13c   : > { %v822_v38 = vsel %vm572_vm1, %v2564_v36, 0  ;;  %v806_v19 = vsel %vm572_vm1, %v2566_v37, 0 }
 0x13d   : > { %847 = vmatpush.bf16.xpose.msra.mxu1 %v838_v32  ;;  %815 = vmatpush.bf16.xpose.msrb.mxu3 %v806_v19 }
 0x13e   : > { %831 = vmatpush.bf16.xpose.msra.mxu0 %v822_v38  ;;  %2032 = vmatmul.msk.bf16.vlgmr.msra.gmra.mxu3 %vm572_vm1, %v2518_v55 }
 0x13f   : > { %2034 = vmatmul.msk.bf16.vlgmr.msrb.gmra.mxu1 %vm572_vm1, %v2516_v54 }
 0x141   : > { %v1258_v39 = vpop.permute.xlu0 %1257 }
 0x142   : > { %v1264_v40 = vsel %vm1262_vm2, %v1258_v39, 0 }
 0x143   : > { %1273 = vmatpush.bf16.msra.mxu2 %v1264_v40 }
 0x144   : > { %2035 = vmatmul.msk.bf16.vlgmr.msrb.gmra.mxu2 %vm572_vm1, %v508_v6 }
 0x147   : > { %2033 = vmatmul.msk.bf16.vlgmr.msrb.gmra.mxu0 %vm572_vm1, %v506_v11 }
 0x14e   : > { %2036 = vmatmul.msk.bf16.vlgmr.msrb.gmra.mxu3 %vm572_vm1, %v509_v21 }
 0x14f   : > { %2038 = vmatmul.msk.bf16.vlgmr.msra.gmra.mxu1 %vm572_vm1, %v511_v20 }
 0x155   : > { %855 = vmax.xlane.f32.xlu0 %v854_v41 }
 0x157   : > { %2037 = vmatmul.msk.bf16.vlgmr.msra.gmra.mxu0 %vm572_vm1, %v510_v33 }
 0x174   : > { %v1331_v43 = vpop.permute.xlu2 %1330 }
 0x175   : > { %v1336_v44 = vsel %vm1262_vm2, %v1331_v43, 0 }
 0x176   : > { %1345 = vmatpush.bf16.msrb.mxu1 %v1336_v44 }
 0x17c   : > { %v1355_v45 = vpop.permute.xlu2 %1354 }
 0x17d   : > { %v1360_v46 = vsel %vm1262_vm2, %v1355_v45, 0 }
 0x17e   : > { %1369 = vmatpush.bf16.msrb.mxu2 %v1360_v46 }
 0x184   : > { %v1379_v47 = vpop.permute.xlu2 %1378 }
 0x185   : > { %v1384_v50 = vsel %vm1262_vm2, %v1379_v47, 0 }
 0x18c   : > { %v1283_v48 = vpop.permute.xlu1 %1282 }
 0x18d   : > { %v1288_v49 = vsel %vm1262_vm2, %v1283_v48, 0 }
 0x18e   : > { %1297 = vmatpush.bf16.msra.mxu3 %v1288_v49 }
 0x192   : > { %1393 = vmatpush.bf16.msrb.mxu3 %v1384_v50 }
 0x194   : > { %v1427_v51 = vpop.permute.xlu1 %1426 }
 0x195   : > { %v1307_v52 = vpop.permute.xlu0 %1306  ;;  %v1432_v53 = vsel %vm1262_vm2, %v1427_v51, 0 }
 0x196   : > { %v1312_v54 = vsel %vm1262_vm2, %v1307_v52, 0  ;;  %1441 = vmatpush.bf16.msra.mxu1 %v1432_v53 }
 0x197   : > { %1321 = vmatpush.bf16.msrb.mxu0 %v1312_v54 }
 0x19b   : > { %v2592_v55 = vpop.f32.mrf.mxu1 }
 0x19c   : > { %v863_v5 = vsel %vm853_vm3, %v2592_v55, -inf }
 0x19d   : > { %v1403_v56 = vpop.permute.xlu0 %1402 }
 0x19e   : > { %v1408_v57 = vsel %vm1262_vm2, %v1403_v56, 0 }
 0x19f   : > { %1417 = vmatpush.bf16.msra.mxu0 %v1408_v57 }
 0x1a1   : > { %v2595_v58 = vpop.f32.mrf.mxu3 }
 0x1a2   : > { %v857_v59 = vsel %vm853_vm3, %v2595_v58, -inf }
 0x1a3   : > { %v647_v60 = vpop.f32.mrf.mxu1  ;;  %858 = vmax.xlane.f32.xlu1 %v857_v59 }
 0x1a4   : > { %v2599_v61 = vpop.f32.mrf.mxu0 }
 0x1a5   : > { %v860_v62 = vsel %vm853_vm3, %v2599_v61, -inf }
 0x1a6   : > { %861 = vmax.xlane.f32.xlu2 %v860_v62 }
 0x1a7   : > { %v2603_v63 = vpop.f32.mrf.mxu2 }
 0x1a8   : > { %v866_v1 = vsel %vm853_vm3, %v2603_v63, -inf }
 0x1a9   : > { %v609_v2 = vpop.f32.mrf.mxu3  ;;  %867 = vmax.xlane.f32.xlu0 %v866_v1 }
 0x1ab   : > { %v2607_v3 = vpop.f32.mrf.mxu1 }
 0x1ac   : > { %v628_v4 = vpop.f32.mrf.mxu0  ;;  %v875_v7 = vsel %vm853_vm3, %v2607_v3, -inf }
 0x1ae   : > { %864 = vmax.xlane.f32.xlu2 %v863_v5 }
 0x1af   : > { %v666_v6 = vpop.f32.mrf.mxu2 }
 0x1b1   : > { %v2613_v8 = vpop.f32.mrf.mxu3  ;;  %876 = vmax.xlane.f32.xlu0 %v875_v7 }
 0x1b2   : > { %v869_v46 = vsel %vm853_vm3, %v2613_v8, -inf }
 0x1b3   : > { %v723_v9 = vpop.f32.mrf.mxu1 }
 0x1b4   : > { %v2615_v10 = vpop.f32.mrf.mxu0 }
 0x1b5   : > { %v872_v11 = vsel %vm853_vm3, %v2615_v10, -inf }
 0x1b6   : > { %873 = vmax.xlane.f32.xlu2 %v872_v11 }
 0x1b7   : > { %v2619_v12 = vpop.f32.mrf.mxu2 }
 0x1b8   : > { %v878_v48 = vsel %vm853_vm3, %v2619_v12, -inf }
 0x1b9   : > { %v685_v13 = vpop.f32.mrf.mxu3 }
 0x1bc   : > { %v2621_v14 = vpop.f32.mrf.mxu1  ;;  %v704_v15 = vpop.f32.mrf.mxu0 }
 0x1bd   : > { %v887_v49 = vsel %vm853_vm3, %v2621_v14, -inf }
 0x1bf   : > { %v739_v16 = vpop.f32.mrf.mxu2 }
 0x1c1   : > { %v2623_v20 = vpop.f32.mrf.mxu3 }
 0x1c2   : > { %v881_v21 = vsel %vm853_vm3, %v2623_v20, -inf }
 0x1c3   : > { %882 = vmax.xlane.f32.xlu2 %v881_v21 }
 0x1c4   : > { %v787_v22 = vpop.f32.mrf.mxu1  ;;  %v2627_v23 = vpop.f32.mrf.mxu0 }
 0x1c5   : > { %v884_v25 = vsel %vm853_vm3, %v2627_v23, -inf }
 0x1c6   : > { %885 = vmax.xlane.f32.xlu0 %v884_v25 }
 0x1c7   : > { %v2631_v26 = vpop.f32.mrf.mxu2 }
 0x1c8   : > { %v856_v29 = vpop.xlane.xlu0 %855  ;;  %v890_v32 = vsel %vm853_vm3, %v2631_v26, -inf }
 0x1c9   : > { %v902_v30 = vsub.f32 %v2541_v18, %v856_v29  ;;  %v755_v31 = vpop.f32.mrf.mxu3 }
 0x1cb   : > { %v918_v33 = vmul.f32 1.442695, %v902_v30  ;;  %891 = vmax.xlane.f32.xlu2 %v890_v32 }
 0x1cc   : > { %v2636_v34 = vpop.f32.mrf.mxu1  ;;  %v771_v35 = vpop.f32.mrf.mxu0 }
 0x1cd   : > { %2206 = vpow2.f32 %v918_v33  ;;  %v899_v50 = vsel %vm853_vm3, %v2636_v34, -inf }
 0x1cf   : > { %v803_v38 = vpop.f32.mrf.mxu2 }
 0x1d1   : > { %v2638_v19 = vpop.f32.mrf.mxu3 }
 0x1d2   : > { %v893_v47 = vsel %vm853_vm3, %v2638_v19, -inf }
 0x1d3   : > { %v2640_v39 = vpop.eup %2206 }
 0x1d4   : > { %v851_v40 = vpop.f32.mrf.mxu1  ;;  %v2642_v41 = vpop.f32.mrf.mxu0  ;;  %v950_v18 = vsel %vm853_vm3, %v2640_v39, 0.0 }
 0x1d5   : > { %951 = vadd.xlane.f32.xlu1 %v950_v18  ;;  %v896_v43 = vsel %vm853_vm3, %v2642_v41, -inf }
 0x1d6   : > { %897 = vmax.xlane.f32.xlu0 %v896_v43 }
 0x1d9   : > { %v819_v44 = vpop.f32.mrf.mxu3 }
 0x1dc   : > { %v835_v45 = vpop.f32.mrf.mxu0 }
 0x1dd   : > { %870 = vmax.xlane.f32.xlu1 %v869_v46 }
 0x1de   : > { %894 = vmax.xlane.f32.xlu0 %v893_v47 }
 0x1e5   : > { %879 = vmax.xlane.f32.xlu1 %v878_v48 }
 0x1ed   : > { %888 = vmax.xlane.f32.xlu1 %v887_v49 }
 0x1f5   : > { %900 = vmax.xlane.f32.xlu1 %v899_v50 }
 0x216   : > { %v859_v51 = vpop.xlane.xlu1 %858 }
 0x217   : > { %v903_v54 = vsub.f32 %v2595_v58, %v859_v51 }
 0x219   : > { %v862_v52 = vpop.xlane.xlu2 %861  ;;  %v920_v62 = vmul.f32 1.442695, %v903_v54 }
 0x21a   : > { %v904_v53 = vsub.f32 %v2599_v61, %v862_v52 }
 0x21c   : > { %v922_v56 = vmul.f32 1.442695, %v904_v53  ;;  %v868_v57 = vpop.xlane.xlu0 %867 }
 0x21d   : > { %v906_v59 = vsub.f32 %v2603_v63, %v868_v57 }
 0x21e   : > { %2208 = vpow2.f32 %v922_v56 }
 0x21f   : > { %v926_v60 = vmul.f32 1.442695, %v906_v59 }
 0x221   : > { %2210 = vpow2.f32 %v926_v60  ;;  %v865_v1 = vpop.xlane.xlu2 %864 }
 0x222   : > { %v905_v2 = vsub.f32 %v2592_v55, %v865_v1  ;;  %2212 = vpow2.f32 %v920_v62 }
 0x224   : > { %v2662_v4 = vpop.eup %2208  ;;  %v924_v5 = vmul.f32 1.442695, %v905_v2  ;;  %v877_v6 = vpop.xlane.xlu0 %876 }
 0x225   : > { %v956_v61 = vsel %vm853_vm3, %v2662_v4, 0.0  ;;  %v909_v13 = vsub.f32 %v2607_v3, %v877_v6 }
 0x226   : > { %2214 = vpow2.f32 %v924_v5  ;;  %957 = vadd.xlane.f32.xlu2 %v956_v61 }
 0x227   : > { %v2666_v58 = vpop.eup %2210  ;;  %v932_v22 = vmul.f32 1.442695, %v909_v13 }
 0x228   : > { %v962_v63 = vsel %vm853_vm3, %v2666_v58, 0.0  ;;  %v2670_v9 = vpop.eup %2212 }
 0x229   : > { %v874_v7 = vpop.xlane.xlu2 %873  ;;  %963 = vadd.xlane.f32.xlu1 %v962_v63  ;;  %v953_v21 = vsel %vm853_vm3, %v2670_v9, 0.0 }
 0x22a   : > { %v908_v55 = vsub.f32 %v2615_v10, %v874_v7 }
 0x22c   : > { %v2673_v11 = vpop.eup %2214  ;;  %v930_v15 = vmul.f32 1.442695, %v908_v55 }
 0x22d   : > { %v959_v16 = vsel %vm853_vm3, %v2673_v11, 0.0 }
 0x22e   : > { %2216 = vpow2.f32 %v930_v15  ;;  %960 = vadd.xlane.f32.xlu0 %v959_v16  ;;  %954 = vadd.xlane.f32.xlu2 %v953_v21  ;;  %v1456_v15 = vsel %vm1262_vm2, %v2584_v42, 0 }
 0x22f   : > { %2218 = vpow2.f32 %v932_v22 }
 0x234   : > { %v2680_v25 = vpop.eup %2216 }
 0x235   : > { %v968_v10 = vsel %vm853_vm3, %v2680_v25, 0.0  ;;  %v2685_v31 = vpop.eup %2218 }
 0x236   : > { %969 = vadd.xlane.f32.xlu2 %v968_v10  ;;  %v883_v29 = vpop.xlane.xlu2 %882  ;;  %v971_v32 = vsel %vm853_vm3, %v2685_v31, 0.0  ;;  %v1496_v10 = vunpack.c.l.b16 %v2553_v28 }
 0x237   : > { %v911_v3 = vsub.f32 %v2623_v20, %v883_v29 }
 0x238   : > { %v1497_v42 = vpack.c.b16 %v1496_v10, %v1496_v10 }
 0x239   : > { %v936_v30 = vmul.f32 1.442695, %v911_v3  ;;  %v886_v40 = vpop.xlane.xlu0 %885 }
 0x23a   : > { %v912_v53 = vsub.f32 %v2627_v23, %v886_v40 }
 0x23b   : > { %2220 = vpow2.f32 %v936_v30 }
 0x23c   : > { %v938_v1 = vmul.f32 1.442695, %v912_v53 }
 0x23e   : > { %972 = vadd.xlane.f32.xlu2 %v971_v32  ;;  %v892_v33 = vpop.xlane.xlu2 %891 }
 0x23f   : > { %v914_v35 = vsub.f32 %v2631_v26, %v892_v33  ;;  %v1592_v33 = vunpack.c.l.b16 %v2564_v36 }
 0x241   : > { %v2690_v38 = vpop.eup %2220  ;;  %v942_v18 = vmul.f32 1.442695, %v914_v35  ;;  %v1472_v35 = vunpack.c.l.b16 %v2537_v17  ;;  %v1593_v40 = vpack.c.b16 %v1592_v33, %v1592_v33 }
 0x242   : > { %v977_v43 = vsel %vm853_vm3, %v2690_v38, 0.0 }
 0x243   : > { %2222 = vpow2.f32 %v942_v18  ;;  %978 = vadd.xlane.f32.xlu0 %v977_v43  ;;  %v1473_v18 = vpack.c.b16 %v1472_v35, %v1472_v35  ;;  %v1520_v43 = vunpack.c.l.b16 %v2551_v27 }
 0x248   : > { %v952_v20 = vpop.xlane.xlu1 %951 }
 0x249   : > { %v2694_v44 = vpop.eup %2222  ;;  %2224 = vrcp.f32 %v952_v20  ;;  %v898_v45 = vpop.xlane.xlu0 %897  ;;  %v1009_v54 = vand.u32 2147483648, %v952_v20  ;;  %vm1003_vm5 = vweird.f32 %v952_v20 }
 0x24a   : > { %v916_v46 = vsub.f32 %v2642_v41, %v898_v45  ;;  %v986_v47 = vsel %vm853_vm3, %v2694_v44, 0.0  ;;  %v1007_v41 = vand.u32 2147483647, %v952_v20 }
 0x24b   : > { %987 = vadd.xlane.f32.xlu0 %v986_v47 }
 0x24c   : > { %v946_v26 = vmul.f32 1.442695, %v916_v46  ;;  %vm1008_vm7 = vcmp.eq.f32.partialorder %v1007_v41, 8.507059e+37 }
 0x24e   : > { %2226 = vpow2.f32 %v946_v26 }
 0x24f   : > { %v2225_v48 = vpop.eup %2224 }
 0x250   : > { %v999_v49 = vmul.f32 %v2225_v48, %v952_v20  ;;  %v871_v50 = vpop.xlane.xlu1 %870  ;;  %vm1004_vm4 = vweird.f32 %v2225_v48  ;;  %v1568_v20 = vunpack.c.l.b16 %v2566_v37 }
 0x251   : > { %v907_v51 = vsub.f32 %v2613_v8, %v871_v50  ;;  %vm1005_vm6 = vmor %vm1003_vm5, %vm1004_vm4  ;;  %v1010_v8 = vor.u32 1.1754944e-38, %v1009_v54  ;;  %v895_v47 = vpop.xlane.xlu0 %894 }
 0x252   : > { %v1000_v52 = vsub.f32 1.0, %v999_v49  ;;  %v1569_v45 = vpack.c.b16 %v1568_v20, %v1568_v20  ;;  %v915_v27 = vsub.f32 %v2638_v19, %v895_v47 }
 0x253   : > { %v928_v56 = vmul.f32 1.442695, %v907_v51 }
 0x254   : > { %v2701_v57 = vpop.eup %2226  ;;  %v1001_v59 = vmul.f32 %v2225_v48, %v1000_v52  ;;  %v944_v53 = vmul.f32 1.442695, %v915_v27 }
 0x255   : > { %2228 = vpow2.f32 %v928_v56  ;;  %v992_v60 = vsel %vm853_vm3, %v2701_v57, 0.0 }
 0x256   : > { %v1002_v62 = vadd.f32 %v2225_v48, %v1001_v59  ;;  %993 = vadd.xlane.f32.xlu0 %v992_v60  ;;  %2230 = vpow2.f32 %v938_v1 }
 0x258   : > { %v1006_v2 = vsel %vm1005_vm6, %v2225_v48, %v1002_v62  ;;  %v880_v23 = vpop.xlane.xlu1 %879 }
 0x259   : > { %v1011_v5 = vsel %vm1008_vm7, %v1010_v8, %v1006_v2  ;;  %v910_v61 = vsub.f32 %v2619_v12, %v880_v23 }
 0x25a   : > { %v1222_v63 = vmul.f32 %v2640_v39, %v1011_v5 }
 0x25b   : > { %v2707_v6 = vpop.eup %2228  ;;  %v934_v7 = vmul.f32 1.442695, %v910_v61 }
 0x25c   : > { %v965_v55 = vsel %vm853_vm3, %v2707_v6, 0.0  ;;  %v1238_v13 = vpack.c.bf16 %v1222_v63, %v1222_v63  ;;  %v2714_v12 = vpop.eup %2230 }
 0x25d   : > { %2232 = vpow2.f32 %v934_v7  ;;  %966 = vadd.xlane.f32.xlu2 %v965_v55  ;;  %v980_v3 = vsel %vm853_vm3, %v2714_v12, 0.0 }
 0x25e   : > { %2039 = vmatmul.msk.bf16.vlgmr.msra.gmra.mxu2 %vm853_vm3, %v1238_v13 }
 0x25f   : > { %1465 = vmatpush.bf16.msra.mxu2 %v1456_v15 }
 0x260   : > { %v889_v16 = vpop.xlane.xlu1 %888 }
 0x261   : > { %v913_v39 = vsub.f32 %v2621_v14, %v889_v16  ;;  %v1544_v14 = vunpack.c.l.b16 %v2527_v0  ;;  %v1521_v0 = vpack.c.b16 %v1520_v43, %v1520_v43 }
 0x263   : > { %v2717_v21 = vpop.eup %2232  ;;  %v940_v22 = vmul.f32 1.442695, %v913_v39  ;;  %v1545_v28 = vpack.c.b16 %v1544_v14, %v1544_v14 }
 0x264   : > { %v974_v29 = vsel %vm853_vm3, %v2717_v21, 0.0 }
 0x265   : > { %2234 = vpow2.f32 %v940_v22  ;;  %975 = vadd.xlane.f32.xlu1 %v974_v29  ;;  %981 = vadd.xlane.f32.xlu2 %v980_v3 }
 0x268   : > { %v901_v46 = vpop.xlane.xlu1 %900 }
 0x269   : > { %v917_v36 = vsub.f32 %v2636_v34, %v901_v46 }
 0x26a   : > { %1498 = vrot.lane.b32.xlu0 %v1497_v42, %s2350_s26 }
 0x26b   : > { %v2725_v30 = vpop.eup %2234  ;;  %v948_v17 = vmul.f32 1.442695, %v917_v36 }
 0x26c   : > { %v983_v32 = vsel %vm853_vm3, %v2725_v30, 0.0 }
 0x26d   : > { %984 = vadd.xlane.f32.xlu1 %v983_v32 }
 0x272   : > { %1546 = vrot.lane.b32.xlu0 %v1545_v28, %s2350_s26 }
 0x27a   : > { %1594 = vrot.lane.b32.xlu0 %v1593_v40, %s2350_s26 }
 0x27d   : > { %1474 = vrot.lane.b32.xlu2 %v1473_v18, %s2350_s26 }
 0x286   : > { %1522 = vrot.lane.b32.xlu1 %v1521_v0, %s2350_s26 }
 0x28e   : > { %1570 = vrot.lane.b32.xlu1 %v1569_v45, %s2350_s26 }
 0x299   : > { %v958_v26 = vpop.xlane.xlu2 %957 }
 0x29a   : > { %2236 = vrcp.f32 %v958_v26  ;;  %v1035_v56 = vand.u32 2147483647, %v958_v26  ;;  %v1037_v59 = vand.u32 2147483648, %v958_v26  ;;  %vm1031_vm9 = vweird.f32 %v958_v26 }
 0x29b   : > { %2238 = vpow2.f32 %v948_v17 }
 0x29c   : > { %v964_v48 = vpop.xlane.xlu1 %963  ;;  %vm1036_vm11 = vcmp.eq.f32.partialorder %v1035_v56, 8.507059e+37  ;;  %v1038_v5 = vor.u32 1.1754944e-38, %v1037_v59 }
 0x29d   : > { %2240 = vrcp.f32 %v964_v48  ;;  %v1063_v19 = vand.u32 2147483647, %v964_v48  ;;  %v1065_v8 = vand.u32 2147483648, %v964_v48  ;;  %vm1059_vm13 = vweird.f32 %v964_v48 }
 0x29f   : > { %vm2751_vm14 = vcmp.eq.f32.partialorder %v1063_v19, 8.507059e+37  ;;  %v1066_v22 = vor.u32 1.1754944e-38, %v1065_v8 }
 0x2a0   : > { %v2237_v49 = vpop.eup %2236 }
 0x2a1   : > { %v1027_v50 = vmul.f32 %v2237_v49, %v958_v26  ;;  %v2741_v51 = vpop.xlane.xlu0 %960  ;;  %v2743_v37 = vpop.xlane.xlu2 %954  ;;  %vm1032_vm8 = vweird.f32 %v2237_v49 }
 0x2a2   : > { %v2745_v52 = vpop.eup %2238  ;;  %2242 = vrcp.f32 %v2741_v51  ;;  %vm1033_vm10 = vmor %vm1031_vm9, %vm1032_vm8  ;;  %v1049_v42 = vand.u32 2147483647, %v2741_v51  ;;  %v1051_v32 = vand.u32 2147483648, %v2741_v51  ;;  %v1023_v33 = vand.u32 2147483648, %v2743_v37 }
 0x2a3   : > { %v2241_v34 = vpop.eup %2240  ;;  %v1028_v54 = vsub.f32 1.0, %v1027_v50  ;;  %2244 = vrcp.f32 %v2743_v37  ;;  %v995_v62 = vsel %vm853_vm3, %v2745_v52, 0.0  ;;  %v1021_v20 = vand.u32 2147483647, %v2743_v37 }
 0x2a4   : > { %v1055_v41 = vmul.f32 %v2241_v34, %v964_v48  ;;  %2246 = vpow2.f32 %v944_v53  ;;  %vm1060_vm12 = vweird.f32 %v2241_v34  ;;  %vm1045_vm6 = vweird.f32 %v2741_v51 }
 0x2a5   : > { %v1029_v60 = vmul.f32 %v2237_v49, %v1028_v54  ;;  %vm1061_vm15 = vmor %vm1059_vm13, %vm1060_vm12  ;;  %v1052_v46 = vor.u32 1.1754944e-38, %v1051_v32  ;;  %vm1017_vm8 = vweird.f32 %v2743_v37  ;;  %vm1050_vm9 = vcmp.eq.f32.partialorder %v1049_v42, 8.507059e+37 }
 0x2a6   : > { %v1056_v1 = vsub.f32 1.0, %v1055_v41  ;;  %996 = vadd.xlane.f32.xlu2 %v995_v62 }
 0x2a7   : > { %v1030_v2 = vadd.f32 %v2237_v49, %v1029_v60 }
 0x2a8   : > { %v2243_v23 = vpop.eup %2242  ;;  %v1057_v61 = vmul.f32 %v2241_v34, %v1056_v1 }
 0x2a9   : > { %v2245_v63 = vpop.eup %2244  ;;  %v1034_v7 = vsel %vm1033_vm10, %v2237_v49, %v1030_v2  ;;  %v1041_v13 = vmul.f32 %v2243_v23, %v2741_v51  ;;  %v2756_v15 = vpop.xlane.xlu2 %969  ;;  %vm1046_vm4 = vweird.f32 %v2243_v23 }
 0x2aa   : > { %v1039_v16 = vsel %vm1036_vm11, %v1038_v5, %v1034_v7  ;;  %v1058_v39 = vadd.f32 %v2241_v34, %v1057_v61  ;;  %v1013_v10 = vmul.f32 %v2245_v63, %v2743_v37  ;;  %2248 = vrcp.f32 %v2756_v15  ;;  %v2764_v35 = vpop.eup %2246  ;;  %vm1047_vm7 = vmor %vm1045_vm6, %vm1046_vm4 }
 0x2ab   : > { %v1224_v29 = vmul.f32 %v2662_v4, %v1039_v16  ;;  %v1042_v3 = vsub.f32 1.0, %v1041_v13  ;;  %vm1018_vm5 = vweird.f32 %v2245_v63  ;;  %vm1022_vm11 = vcmp.eq.f32.partialorder %v1021_v20, 8.507059e+37 }
 0x2ac   : > { %v1062_v14 = vsel %vm1061_vm15, %v2241_v34, %v1058_v39  ;;  %v1014_v28 = vsub.f32 1.0, %v1013_v10  ;;  %vm1019_vm10 = vmor %vm1017_vm8, %vm1018_vm5  ;;  %v1093_v54 = vand.u32 2147483648, %v2756_v15  ;;  %v1091_v41 = vand.u32 2147483647, %v2756_v15 }
 0x2ad   : > { %v1067_v40 = vsel %vm2751_vm14, %v1066_v22, %v1062_v14  ;;  %v1043_v18 = vmul.f32 %v2243_v23, %v1042_v3  ;;  %v1240_v4 = vpack.c.bf16 %v1224_v29, %v1224_v29  ;;  %v989_v19 = vsel %vm853_vm3, %v2764_v35, 0.0 }
 0x2ae   : > { %v1226_v43 = vmul.f32 %v2666_v58, %v1067_v40  ;;  %v1015_v0 = vmul.f32 %v2245_v63, %v1014_v28  ;;  %v1024_v58 = vor.u32 1.1754944e-38, %v1023_v33  ;;  %vm1087_vm13 = vweird.f32 %v2756_v15 }
 0x2af   : > { %v1044_v45 = vadd.f32 %v2243_v23, %v1043_v18  ;;  %2041 = vmatmul.msk.bf16.vlgmr.msrb.gmra.mxu0 %vm853_vm3, %v1240_v4  ;;  %vm1092_vm15 = vcmp.eq.f32.partialorder %v1091_v41, 8.507059e+37  ;;  %v1616_v29 = vunpack.c.l.b16 %v2549_v24 }
 0x2b0   : > { %v1016_v36 = vadd.f32 %v2245_v63, %v1015_v0  ;;  %v1242_v17 = vpack.c.bf16 %v1226_v43, %v1226_v43  ;;  %v2249_v47 = vpop.eup %2248 }
 0x2b1   : > { %v1048_v26 = vsel %vm1047_vm7, %v2243_v23, %v1044_v45  ;;  %v973_v48 = vpop.xlane.xlu2 %972  ;;  %v1083_v50 = vmul.f32 %v2249_v47, %v2756_v15  ;;  %vm1088_vm12 = vweird.f32 %v2249_v47  ;;  %v1617_v42 = vpack.c.b16 %v1616_v29, %v1616_v29 }
 0x2b2   : > { %v1053_v27 = vsel %vm1050_vm9, %v1052_v46, %v1048_v26  ;;  %v1020_v49 = vsel %vm1019_vm10, %v2245_v63, %v1016_v36  ;;  %2043 = vmatmul.msk.bf16.vlgmr.msrb.gmra.mxu2 %vm853_vm3, %v1242_v17  ;;  %2250 = vrcp.f32 %v973_v48  ;;  %vm1089_vm14 = vmor %vm1087_vm13, %vm1088_vm12  ;;  %v1107_v61 = vand.u32 2147483648, %v973_v48 }
 0x2b3   : > { %v1225_v51 = vmul.f32 %v2673_v11, %v1053_v27  ;;  %v1025_v34 = vsel %vm1022_vm11, %v1024_v58, %v1020_v49  ;;  %v1084_v53 = vsub.f32 1.0, %v1083_v50  ;;  %v1094_v11 = vor.u32 1.1754944e-38, %v1093_v54 }
 0x2b4   : > { %v1223_v37 = vmul.f32 %v2670_v9, %v1025_v34  ;;  %v1105_v7 = vand.u32 2147483647, %v973_v48  ;;  %vm1101_vm5 = vweird.f32 %v973_v48  ;;  %v1108_v15 = vor.u32 1.1754944e-38, %v1107_v61 }
 0x2b5   : > { %v1241_v56 = vpack.c.bf16 %v1225_v51, %v1225_v51  ;;  %v1085_v59 = vmul.f32 %v2249_v47, %v1084_v53 }
 0x2b6   : > { %v1239_v60 = vpack.c.bf16 %v1223_v37, %v1223_v37  ;;  %vm1106_vm7 = vcmp.eq.f32.partialorder %v1105_v7, 8.507059e+37  ;;  %v2786_v39 = vpop.xlane.xlu0 %978 }
 0x2b7   : > { %2042 = vmatmul.msk.bf16.vlgmr.msrb.gmra.mxu1 %vm853_vm3, %v1241_v56  ;;  %v1086_v62 = vadd.f32 %v2249_v47, %v1085_v59  ;;  %2252 = vrcp.f32 %v2786_v39  ;;  %vm1129_vm10 = vweird.f32 %v2786_v39  ;;  %v1133_v27 = vand.u32 2147483647, %v2786_v39 }
 0x2b8   : > { %2040 = vmatmul.msk.bf16.vlgmr.msra.gmra.mxu3 %vm853_vm3, %v1239_v60  ;;  %990 = vadd.xlane.f32.xlu1 %v989_v19  ;;  %v2251_v9 = vpop.eup %2250 }
 0x2b9   : > { %v1090_v1 = vsel %vm1089_vm14, %v2249_v47, %v1086_v62  ;;  %v1097_v8 = vmul.f32 %v2251_v9, %v973_v48  ;;  %vm1102_vm4 = vweird.f32 %v2251_v9 }
 0x2ba   : > { %v1095_v2 = vsel %vm1092_vm15, %v1094_v11, %v1090_v1  ;;  %vm1103_vm6 = vmor %vm1101_vm5, %vm1102_vm4 }
 0x2bb   : > { %v1228_v23 = vmul.f32 %v2680_v25, %v1095_v2  ;;  %v1098_v5 = vsub.f32 1.0, %v1097_v8 }
 0x2bd   : > { %v1099_v63 = vmul.f32 %v2251_v9, %v1098_v5  ;;  %v1244_v55 = vpack.c.bf16 %v1228_v23, %v1228_v23  ;;  %v2795_v32 = vpop.eup %2252 }
 0x2be   : > { %v2792_v3 = vpop.xlane.xlu0 %987  ;;  %vm1130_vm12 = vweird.f32 %v2795_v32 }
 0x2bf   : > { %v1100_v13 = vadd.f32 %v2251_v9, %v1099_v63  ;;  %2045 = vmatmul.msk.bf16.vlgmr.msra.gmra.mxu0 %vm853_vm3, %v1244_v55  ;;  %vm2841_vm4 = vmor %vm1129_vm10, %vm1130_vm12 }
 0x2c1   : > { %v1104_v16 = vsel %vm1103_vm6, %v2251_v9, %v1100_v13 }
 0x2c2   : > { %v1109_v22 = vsel %vm1106_vm7, %v1108_v15, %v1104_v16  ;;  %v1135_v15 = vand.u32 2147483648, %v2786_v39 }
 0x2c3   : > { %v1229_v10 = vmul.f32 %v2685_v31, %v1109_v22  ;;  %v1125_v31 = vmul.f32 %v2795_v32, %v2786_v39 }
 0x2c5   : > { %v1245_v25 = vpack.c.bf16 %v1229_v10, %v1229_v10  ;;  %v1126_v4 = vsub.f32 1.0, %v1125_v31 }
 0x2c7   : > { %2046 = vmatmul.msk.bf16.vlgmr.msra.gmra.mxu1 %vm853_vm3, %v1245_v25  ;;  %v1127_v17 = vmul.f32 %v2795_v32, %v1126_v4 }
 0x2c9   : > { %v2797_v28 = vpop.xlane.xlu0 %993  ;;  %v1128_v54 = vadd.f32 %v2795_v32, %v1127_v17 }
 0x2d0   : > { %v967_v14 = vpop.xlane.xlu2 %966 }
 0x2d1   : > { %2254 = vrcp.f32 %v967_v14  ;;  %1618 = vrot.lane.b32.xlu1 %v1617_v42, %s2350_s26  ;;  %v1079_v0 = vand.u32 2147483648, %v967_v14  ;;  %v1077_v45 = vand.u32 2147483647, %v967_v14  ;;  %vm1073_vm9 = vweird.f32 %v967_v14 }
 0x2d2   : > { %2256 = vrcp.f32 %v2792_v3 }
 0x2d3   : > { %2258 = vrcp.f32 %v2797_v28  ;;  %v1080_v49 = vor.u32 1.1754944e-38, %v1079_v0  ;;  %vm1078_vm13 = vcmp.eq.f32.partialorder %v1077_v45, 8.507059e+37 }
 0x2d7   : > { %v2255_v33 = vpop.eup %2254 }
 0x2d8   : > { %v1069_v24 = vmul.f32 %v2255_v33, %v967_v14  ;;  %v2803_v40 = vpop.xlane.xlu1 %975  ;;  %v2805_v18 = vpop.xlane.xlu2 %981  ;;  %vm1074_vm8 = vweird.f32 %v2255_v33 }
 0x2d9   : > { %2260 = vrcp.f32 %v2803_v40  ;;  %v2809_v36 = vpop.eup %2256  ;;  %vm1075_vm11 = vmor %vm1073_vm9, %vm1074_vm8  ;;  %v1119_v11 = vand.u32 2147483647, %v2803_v40  ;;  %v1121_v1 = vand.u32 2147483648, %v2803_v40  ;;  %v1149_v5 = vand.u32 2147483648, %v2805_v18 }
 0x2da   : > { %v1070_v43 = vsub.f32 1.0, %v1069_v24  ;;  %2262 = vrcp.f32 %v2805_v18  ;;  %v2813_v26 = vpop.eup %2258  ;;  %v1167_v60 = vmul.f32 %v2809_v36, %v2792_v3  ;;  %v1147_v55 = vand.u32 2147483647, %v2805_v18 }
 0x2db   : > { %v1195_v19 = vmul.f32 %v2813_v26, %v2797_v28  ;;  %vm1115_vm5 = vweird.f32 %v2803_v40  ;;  %v1122_v29 = vor.u32 1.1754944e-38, %v1121_v1  ;;  %vm1143_vm7 = vweird.f32 %v2805_v18 }
 0x2dc   : > { %v1071_v20 = vmul.f32 %v2255_v33, %v1070_v43  ;;  %v1499_v46 = vpop.permute.xlu0 %1498  ;;  %v1168_v16 = vsub.f32 1.0, %v1167_v60  ;;  %vm1120_vm8 = vcmp.eq.f32.partialorder %v1119_v11, 8.507059e+37  ;;  %v1150_v31 = vor.u32 1.1754944e-38, %v1149_v5 }
 0x2dd   : > { %v1504_v47 = vsel %vm1262_vm2, %v1499_v46, 0  ;;  %v1196_v25 = vsub.f32 1.0, %v1195_v19  ;;  %v1132_v24 = vsel %vm2841_vm4, %v2795_v32, %v1128_v54  ;;  %vm1148_vm10 = vcmp.eq.f32.partialorder %v1147_v55, 8.507059e+37 }
 0x2de   : > { %v1072_v58 = vadd.f32 %v2255_v33, %v1071_v20  ;;  %1513 = vmatpush.bf16.msrb.mxu0 %v1504_v47  ;;  %v1169_v0 = vmul.f32 %v2809_v36, %v1168_v16  ;;  %v1136_v46 = vor.u32 1.1754944e-38, %v1135_v15  ;;  %v1177_v32 = vand.u32 2147483648, %v2792_v3 }
 0x2df   : > { %v2261_v48 = vpop.eup %2260  ;;  %v1197_v17 = vmul.f32 %v2813_v26, %v1196_v25  ;;  %vm1171_vm4 = vweird.f32 %v2792_v3  ;;  %v1203_v60 = vand.u32 2147483647, %v2797_v28 }
 0x2e0   : > { %v2263_v50 = vpop.eup %2262  ;;  %v1076_v51 = vsel %vm1075_vm11, %v2255_v33, %v1072_v58  ;;  %v1111_v34 = vmul.f32 %v2261_v48, %v2803_v40  ;;  %v2819_v37 = vpop.xlane.xlu1 %984  ;;  %vm1116_vm14 = vweird.f32 %v2261_v48  ;;  %vm1134_vm11 = vcmp.eq.f32.partialorder %v1133_v27, 8.507059e+37 }
 0x2e1   : > { %v1475_v53 = vpop.permute.xlu2 %1474  ;;  %v1081_v56 = vsel %vm1078_vm13, %v1080_v49, %v1076_v51  ;;  %v1139_v59 = vmul.f32 %v2263_v50, %v2805_v18  ;;  %2264 = vrcp.f32 %v2819_v37  ;;  %v2824_v41 = vpop.f32.mrf.mxu2  ;;  %vm1144_vm15 = vweird.f32 %v2263_v50  ;;  %vm1117_vm6 = vmor %vm1115_vm5, %vm1116_vm14 }
 0x2e2   : > { %v1227_v62 = vmul.f32 %v2707_v6, %v1081_v56  ;;  %v1112_v9 = vsub.f32 1.0, %v1111_v34  ;;  %v1480_v2 = vsel %vm1262_vm2, %v1475_v53, 0  ;;  %vm1145_vm9 = vmor %vm1143_vm7, %vm1144_vm15  ;;  %v1170_v34 = vadd.f32 %v2809_v36, %v1169_v0 }
 0x2e3   : > { %v1140_v8 = vsub.f32 1.0, %v1139_v59  ;;  %1489 = vmatpush.bf16.msra.mxu3 %v1480_v2  ;;  %vm1172_vm13 = vweird.f32 %v2809_v36  ;;  %v1198_v39 = vadd.f32 %v2813_v26, %v1197_v17  ;;  %vm1200_vm14 = vweird.f32 %v2813_v26 }
 0x2e4   : > { %v1113_v23 = vmul.f32 %v2261_v48, %v1112_v9  ;;  %v1547_v61 = vpop.permute.xlu0 %1546  ;;  %v1243_v63 = vpack.c.bf16 %v1227_v62, %v1227_v62  ;;  %vm1157_vm15 = vweird.f32 %v2819_v37  ;;  %v1161_v27 = vand.u32 2147483647, %v2819_v37 }
 0x2e5   : > { %v1141_v7 = vmul.f32 %v2263_v50, %v1140_v8  ;;  %v1552_v6 = vsel %vm1262_vm2, %v1547_v61, 0  ;;  %v1175_v56 = vand.u32 2147483647, %v2792_v3  ;;  %v1205_v59 = vand.u32 2147483648, %v2797_v28 }
 0x2e6   : > { %v1114_v22 = vadd.f32 %v2261_v48, %v1113_v23  ;;  %2044 = vmatmul.msk.bf16.vlgmr.msrb.gmra.mxu3 %vm853_vm3, %v1243_v63  ;;  %1561 = vmatpush.bf16.msrb.mxu2 %v1552_v6  ;;  %vm1199_vm7 = vweird.f32 %v2797_v28  ;;  %v1178_v62 = vor.u32 1.1754944e-38, %v1177_v32 }
 0x2e7   : > { %v2265_v10 = vpop.eup %2264  ;;  %v1142_v42 = vadd.f32 %v2263_v50, %v1141_v7  ;;  %v1206_v3 = vor.u32 1.1754944e-38, %v1205_v59 }
 0x2e8   : > { %v1118_v14 = vsel %vm1117_vm6, %v2261_v48, %v1114_v22  ;;  %v1153_v33 = vmul.f32 %v2265_v10, %v2819_v37  ;;  %vm1158_vm12 = vweird.f32 %v2265_v10  ;;  %vm1173_vm6 = vmor %vm1171_vm4, %vm1172_vm13 }
 0x2e9   : > { %v1123_v40 = vsel %vm1120_vm8, %v1122_v29, %v1118_v14  ;;  %v1146_v4 = vsel %vm1145_vm9, %v2263_v50, %v1142_v42  ;;  %v1277_v43 = vpop.f32.mrf.mxu2  ;;  %v1137_v50 = vsel %vm1134_vm11, %v1136_v46, %v1132_v24  ;;  %vm1159_vm5 = vmor %vm1157_vm15, %vm1158_vm12  ;;  %v1174_v19 = vsel %vm1173_vm6, %v2809_v36, %v1170_v34 }
 0x2ea   : > { %v1230_v20 = vmul.f32 %v2717_v21, %v1123_v40  ;;  %v1151_v18 = vsel %vm1148_vm10, %v1150_v31, %v1146_v4  ;;  %v1154_v45 = vsub.f32 1.0, %v1153_v33  ;;  %v1231_v54 = vmul.f32 %v2690_v38, %v1137_v50  ;;  %vm1201_vm8 = vmor %vm1199_vm7, %vm1200_vm14 }
 0x2eb   : > { %v1232_v47 = vmul.f32 %v2714_v12, %v1151_v18  ;;  %v1163_v12 = vand.u32 2147483648, %v2819_v37  ;;  %v1202_v9 = vsel %vm1201_vm8, %v2813_v26, %v1198_v39  ;;  %vm1162_vm9 = vcmp.eq.f32.partialorder %v1161_v27, 8.507059e+37 }
 0x2ec   : > { %v1155_v58 = vmul.f32 %v2265_v10, %v1154_v45  ;;  %v1595_v48 = vpop.permute.xlu0 %1594  ;;  %v1246_v49 = vpack.c.bf16 %v1230_v20, %v1230_v20  ;;  %vm1176_vm10 = vcmp.eq.f32.partialorder %v1175_v56, 8.507059e+37  ;;  %v1247_v1 = vpack.c.bf16 %v1231_v54, %v1231_v54 }
 0x2ed   : > { %v1600_v51 = vsel %vm1262_vm2, %v1595_v48, 0  ;;  %v1248_v21 = vpack.c.bf16 %v1232_v47, %v1232_v47  ;;  %v1164_v38 = vor.u32 1.1754944e-38, %v1163_v12  ;;  %v1179_v8 = vsel %vm1176_vm10, %v1178_v62, %v1174_v19 }
 0x2ee   : > { %v1156_v53 = vadd.f32 %v2265_v10, %v1155_v58  ;;  %2047 = vmatmul.msk.bf16.vlgmr.msra.gmra.mxu2 %vm853_vm3, %v1246_v49  ;;  %1609 = vmatpush.bf16.msra.mxu0 %v1600_v51  ;;  %vm1204_vm11 = vcmp.eq.f32.partialorder %v1203_v60, 8.507059e+37  ;;  %v1234_v23 = vmul.f32 %v2694_v44, %v1179_v8  ;;  %vm1671_vm8 = vcmask 130048  }
 0x2ef   : > { %2049 = vmatmul.msk.bf16.vlgmr.msrb.gmra.mxu0 %vm853_vm3, %v1248_v21  ;;  %v1207_v2 = vsel %vm1204_vm11, %v1206_v3, %v1202_v9  ;;  %vm1677_vm10 = vcmask 228352  }
 0x2f0   : > { %v1160_v37 = vsel %vm1159_vm5, %v2265_v10, %v1156_v53  ;;  %v1236_v5 = vmul.f32 %v2701_v57, %v1207_v2  ;;  %v1250_v63 = vpack.c.bf16 %v1234_v23, %v1234_v23 }
 0x2f1   : > { %v1165_v11 = vsel %vm1162_vm9, %v1164_v38, %v1160_v37  ;;  %vm1673_vm9 = vcmask 162816  }
 0x2f2   : > { %v1233_v28 = vmul.f32 %v2725_v30, %v1165_v11  ;;  %v1252_v7 = vpack.c.bf16 %v1236_v5, %v1236_v5 }
 0x2f4   : > { %v1249_v26 = vpack.c.bf16 %v1233_v28, %v1233_v28 }
 0x2f6   : > { %2048 = vmatmul.msk.bf16.vlgmr.msra.gmra.mxu3 %vm853_vm3, %v1247_v1 }
 0x2f8   : > { %v1523_v36 = vpop.permute.xlu1 %1522 }
 0x2f9   : > { %v1528_v61 = vsel %vm1262_vm2, %v1523_v36, 0 }
 0x2fa   : > { %1537 = vmatpush.bf16.msrb.mxu1 %v1528_v61 }
 0x2fd   : > { %2050 = vmatmul.msk.bf16.vlgmr.msrb.gmra.mxu1 %vm853_vm3, %v1249_v26 }
 0x2fe   : > { %2051 = vmatmul.msk.bf16.vlgmr.msrb.gmra.mxu2 %vm853_vm3, %v1250_v63 }
 0x2ff   : > { %2053 = vmatmul.msk.bf16.vlgmr.msra.gmra.mxu0 %vm853_vm3, %v1252_v7 }
 0x300   : > { %v1571_v55 = vpop.permute.xlu1 %1570 }
 0x301   : > { %v1576_v30 = vsel %vm1262_vm2, %v1571_v55, 0 }
 0x302   : > { %1585 = vmatpush.bf16.msrb.mxu3 %v1576_v30 }
 0x319   : > { %v997_v44 = vpop.xlane.xlu2 %996 }
 0x31a   : > { %2266 = vrcp.f32 %v997_v44  ;;  %v1219_v43 = vand.u32 2147483648, %v997_v44  ;;  %vm1213_vm15 = vweird.f32 %v997_v44  ;;  %v1217_v20 = vand.u32 2147483647, %v997_v44 }
 0x31c   : > { %v1220_v58 = vor.u32 1.1754944e-38, %v1219_v43  ;;  %vm1218_vm7 = vcmp.eq.f32.partialorder %v1217_v20, 8.507059e+37 }
 0x320   : > { %v2267_v6 = vpop.eup %2266 }
 0x321   : > { %v1209_v13 = vmul.f32 %v2267_v6, %v997_v44  ;;  %vm1214_vm13 = vweird.f32 %v2267_v6 }
 0x322   : > { %vm1215_vm5 = vmor %vm1213_vm15, %vm1214_vm13 }
 0x323   : > { %v1210_v16 = vsub.f32 1.0, %v1209_v13  ;;  %v2091_v13 = vld [vmem:[%s2997_s6] sm:$0xff] }
 0x325   : > { %v1211_v25 = vmul.f32 %v2267_v6, %v1210_v16 }
 0x327   : > { %v1212_v4 = vadd.f32 %v2267_v6, %v1211_v25 }
 0x329   : > { %v1216_v17 = vsel %vm1215_vm5, %v2267_v6, %v1212_v4 }
 0x32a   : > { %v1221_v51 = vsel %vm1218_vm7, %v1220_v58, %v1216_v17 }
 0x32b   : > { %v991_v57 = vpop.xlane.xlu1 %990  ;;  %v1237_v34 = vmul.f32 %v2745_v52, %v1221_v51 }
 0x32c   : > { %2268 = vrcp.f32 %v991_v57  ;;  %v1323_v15 = vpop.f32.mrf.mxu0  ;;  %v1191_v33 = vand.u32 2147483648, %v991_v57  ;;  %v1189_v40 = vand.u32 2147483647, %v991_v57  ;;  %vm1185_vm14 = vweird.f32 %v991_v57 }
 0x32d   : > { %v1253_v56 = vpack.c.bf16 %v1237_v34, %v1237_v34 }
 0x32e   : > { %v1192_v18 = vor.u32 1.1754944e-38, %v1191_v33  ;;  %vm1190_vm6 = vcmp.eq.f32.partialorder %v1189_v40, 8.507059e+37 }
 0x332   : > { %v2269_v22 = vpop.eup %2268 }
 0x333   : > { %v1181_v10 = vmul.f32 %v2269_v22, %v991_v57  ;;  %vm1186_vm12 = vweird.f32 %v2269_v22  ;;  %v2092_v57 = vld [vmem:[%s2997_s6 + $0x8] sm:$0xff] }
 0x334   : > { %v1325_v29 = vpop.f32.mrf.mxu0  ;;  %v1347_v42 = vpop.f32.mrf.mxu1  ;;  %vm1187_vm4 = vmor %vm1185_vm14, %vm1186_vm12  ;;  %1744 = vmatpush.bf16.msra.mxu2 %v2092_v57 }
 0x335   : > { %v1182_v14 = vsub.f32 1.0, %v1181_v10  ;;  %v2892_v31 = vpop.f32.mrf.mxu2 }
 0x337   : > { %v1183_v24 = vmul.f32 %v2269_v22, %v1182_v14 }
 0x338   : > { %1745 = vmatpush.bf16.msra.mxu2 %v2091_v13 }
 0x339   : > { %v1184_v0 = vadd.f32 %v2269_v22, %v1183_v24 }
 0x33b   : > { %v1188_v45 = vsel %vm1187_vm4, %v2269_v22, %v1184_v0  ;;  %v1299_v46 = vpop.f32.mrf.mxu3 }
 0x33c   : > { %v1193_v47 = vsel %vm1190_vm6, %v1192_v18, %v1188_v45  ;;  %v1349_v32 = vpop.f32.mrf.mxu1  ;;  %v1419_v49 = vpop.f32.mrf.mxu0 }
 0x33d   : > { %v1235_v48 = vmul.f32 %v2764_v35, %v1193_v47  ;;  %v1373_v50 = vpop.f32.mrf.mxu2 }
 0x33f   : > { %v1251_v21 = vpack.c.bf16 %v1235_v48, %v1235_v48 }
 0x341   : > { %2052 = vmatmul.msk.bf16.vlgmr.msrb.gmra.mxu3 %vm853_vm3, %v1251_v21 }
 0x343   : > { %v1301_v53 = vpop.f32.mrf.mxu3  ;;  %v1619_v12 = vpop.permute.xlu1 %1618 }
 0x344   : > { %v1624_v39 = vsel %vm1262_vm2, %v1619_v12, 0  ;;  %v1421_v27 = vpop.f32.mrf.mxu0  ;;  %v1443_v54 = vpop.f32.mrf.mxu1  ;;  %vm1669_vm2 = vcmask 97280  }
 0x345   : > { %1633 = vmatpush.bf16.msra.mxu1 %v1624_v39 }
 0x348   : > { %2054 = vmatmul.msk.bf16.vlgmr.msra.gmra.mxu1 %vm853_vm3, %v1253_v56 }
 0x34c   : > { %v1445_v35 = vpop.f32.mrf.mxu1 }
 0x34d   : > { %v2204_v35 = vld [vmem:[%s2998_s7] ss:$0 sm:$0xff] }
 0x369   : > { %v1395_v59 = vpop.f32.mrf.mxu3 }
 0x36c   : > { %v1515_v60 = vpop.f32.mrf.mxu0 }
 0x36d   : > { %v2167_v37 = vpack.i.bf16 %v1515_v60, %v1323_v15 }
 0x36f   : > { %2168 = vrot.lane.b32.xlu2 %v2167_v37, %s2351_s15  ;;  %v2916_v37 = vld [vmem:[%s2484_s19] sm:$0xff]  ;;  %s390_s15 = sand.u32 1, %s2333_s18   ;;  %s2083_s19 = sshll.u32 %s2440_s21, 3 }
 0x370   : > { %s1911_s21 = scalar_lea.sflag [#allocation3], %s390_s15 }
 0x371   : > { %v1397_v19 = vpop.f32.mrf.mxu3  ;;  %v1467_v38 = vpop.f32.mrf.mxu2 }
 0x374   : > { %v1517_v62 = vpop.f32.mrf.mxu0 }
 0x379   : > { %v1469_v52 = vpop.f32.mrf.mxu2  ;;  %v1491_v9 = vpop.f32.mrf.mxu3 }
 0x37a   : > { %v2177_v3 = vpack.i.bf16 %v1491_v9, %v1299_v46  ;;  %v1539_v11 = vpop.f32.mrf.mxu1 }
 0x37b   : > { %v2172_v1 = vpack.i.bf16 %v1539_v11, %v1347_v42 }
 0x37c   : > { %v1611_v8 = vpop.f32.mrf.mxu0  ;;  %2178 = vrot.lane.b32.xlu0 %v2177_v3, %s2352_s16  ;;  %s2001_s16 = sshll.u32 %s390_s15, 3 }
 0x37d   : > { %2173 = vrot.lane.b32.xlu1 %v2172_v1, %s2353_s22  ;;  %v2187_v26 = vpack.i.bf16 %v1611_v8, %v1419_v49 }
 0x381   : > { %v1493_v2 = vpop.f32.mrf.mxu3  ;;  %v1563_v28 = vpop.f32.mrf.mxu2 }
 0x382   : > { %v2182_v23 = vpack.i.bf16 %v1563_v28, %v2892_v31  ;;  %v1541_v36 = vpop.f32.mrf.mxu1  ;;  %v2358_v28 = vmov 32.0  }
 0x383   : > { %2270 = vrcp.f32 %v2358_v28 }
 0x384   : > { %v1613_v5 = vpop.f32.mrf.mxu0  ;;  %2183 = vrot.lane.b32.xlu0 %v2182_v23, %s2354_s24 }
 0x389   : > { %v1565_v61 = vpop.f32.mrf.mxu2  ;;  %v2271_v23 = vpop.eup %2270 }
 0x38a   : > { %v1757_v36 = vmul.f32 32.0, %v2271_v23 }
 0x38c   : > { %2188 = vrot.lane.b32.xlu0 %v2187_v26, %s2355_s25  ;;  %v1758_v5 = vsub.f32 1.0, %v1757_v36  ;;  %v2096_v26 = vld [vmem:[%s3000_s9 + $0x8] sm:$0xff]  ;;  %s1921_s25 = scalar_lea.hbm %s3002_s11, %s2083_s19  ;;  %s2299_s19 = scalar_lea.hbm %s3002_s11, 16 }
 0x38d   : > { %1842 = vmatpush.bf16.msra.mxu3 %v2096_v26  ;;  %s1925_s12 = sshll.u32 %s1921_s25, 4  ;;  %s1926_s12 = int_to_ptr.hbm [resolvable:$true] %s1925_s12 }
 0x38e   : > { %v1759_v61 = vmul.f32 %v2271_v23, %v1758_v5  ;;  %s2293_s13 = sshra.s32 %s1926_s12, 4  ;;  %s2294_s13 = int_to_ptr.hbm [resolvable:$true] %s2293_s13 }
 0x38f   : > { %s2295_s14 = scalar_lea.hbm %s2294_s13, 8  ;;  %p2300_p0 = scmp.lt.s32.totalorder %s2294_s13, %s3002_s11 }
 0x390   : > { %p2296_p11 = scmp.ne.s32.totalorder %s2294_s13, %s2295_s14  ;;  %p2301_p1 = scmp.lt.s32.totalorder %s2299_s19, %s2295_s14 }
 0x392   : > { %p2297_p12 = pnand %p2296_p11, %p2457_p5  ;;  %p2302_p2 = por %p2301_p1, %p2300_p0 }
 0x394   : > { %p2298_p13 = pneg %p2297_p12 }
 0x396   : > { %p2303_p3 = pnand %p2302_p2, %p2298_p13 }
 0x3c4   : > { %v1587_v63 = vpop.f32.mrf.mxu3 }
 0x3c5   : > { %v2192_v7 = vpack.i.bf16 %v1587_v63, %v1395_v59  ;;  %v1635_v55 = vpop.f32.mrf.mxu1  ;;  %v1760_v63 = vadd.f32 %v2271_v23, %v1759_v61 }
 0x3c6   : > { %v2197_v44 = vpack.i.bf16 %v1635_v55, %v1443_v54 }
 0x3c7   : > { %2193 = vrot.lane.b32.xlu1 %v2192_v7, %s2356_s29  ;;  %v2095_v7 = vld [vmem:[%s3000_s9] sm:$0xff]  ;;  %s392_s29 = scalar_lea.vmem [#allocation2], %s2001_s16 }
 0x3c8   : > { %1843 = vmatpush.bf16.msra.mxu3 %v2095_v7 }
 0x3c9   : > { %v2169_v29 = vpop.permute.xlu2 %2168 }
 0x3ca   : > { %v2171_v31 = vunpack.i.h.bf16 %v2169_v29  ;;  %v2170_v33 = vunpack.i.l.bf16 %v2169_v29 }
 0x3cc   : > { %v1589_v30 = vpop.f32.mrf.mxu3 }
 0x3cd   : > { %v1637_v6 = vpop.f32.mrf.mxu1 }
 0x3ce   : > { %v2094_v6 = vld [vmem:[%s2999_s8 + $0x8] sm:$0xff] }
 0x3cf   : > { %2198 = vrot.lane.b32.xlu1 %v2197_v44, %s2357_s30  ;;  %1870 = vmatpush.bf16.msrb.mxu0 %v2094_v6  ;;  %s1923_s30 = sshll.u32 %s392_s29, 4  ;;  %s1924_s30 = int_to_ptr.vmem [resolvable:$true] %s1923_s30 }
 0x3ee   : > { %v2179_v15 = vpop.permute.xlu0 %2178 }
 0x3ef   : > { %v2174_v16 = vpop.permute.xlu1 %2173  ;;  %v2181_v22 = vunpack.i.h.bf16 %v2179_v15  ;;  %v2180_v10 = vunpack.i.l.bf16 %v2179_v15 }
 0x3f0   : > { %v2176_v40 = vunpack.i.h.bf16 %v2174_v16  ;;  %v2175_v4 = vunpack.i.l.bf16 %v2174_v16 }
 0x3f1   : > { %v1667_v42 = vsel %vm572_vm1, %v2824_v41, %v2180_v10  ;;  %v1707_v14 = vsel %vm572_vm1, %v1467_v38, %v2181_v22  ;;  %vm1675_vm1 = vcmask 195584   ;;  %v2093_v22 = vld [vmem:[%s2999_s8] sm:$0xff] }
 0x3f2   : > { %v1668_v43 = vsel %vm853_vm3, %v1667_v42, %v2170_v33  ;;  %v1708_v0 = vsel %vm853_vm3, %v1707_v14, %v2171_v31  ;;  %vm1761_vm3 = vweird.f32 %v2271_v23  ;;  %1871 = vmatpush.bf16.msrb.mxu0 %v2093_v22 }
 0x3f3   : > { %v1670_v17 = vsel %vm1669_vm2, %v1668_v43, %v2175_v4  ;;  %v1709_v41 = vsel %vm1669_vm2, %v1708_v0, %v2176_v40  ;;  %v2935_v55 = vsel %vm1761_vm3, %v2271_v23, %v1760_v63 }
 0x3f6   : > { %v2184_v25 = vpop.permute.xlu0 %2183 }
 0x3f7   : > { %v2186_v20 = vunpack.i.h.bf16 %v2184_v25  ;;  %v2185_v18 = vunpack.i.l.bf16 %v2184_v25 }
 0x3f9   : > { %v1710_v32 = vsel %vm1671_vm8, %v1709_v41, %v2186_v20  ;;  %v1672_v58 = vsel %vm1671_vm8, %v1670_v17, %v2185_v18 }
 0x3fe   : > { %v2189_v47 = vpop.permute.xlu0 %2188 }
 0x3ff   : > { %v2191_v50 = vunpack.i.h.bf16 %v2189_v47  ;;  %v2190_v51 = vunpack.i.l.bf16 %v2189_v47 }
 0x439   : > { %v2194_v24 = vpop.permute.xlu1 %2193 }
 0x43a   : > { %v2196_v45 = vunpack.i.h.bf16 %v2194_v24  ;;  %v2195_v46 = vunpack.i.l.bf16 %v2194_v24 }
 0x43c   : > { %v1674_v48 = vsel %vm1673_vm9, %v1672_v58, %v2195_v46  ;;  %v1711_v49 = vsel %vm1673_vm9, %v1710_v32, %v2196_v45 }
 0x43d   : > { %v1676_v12 = vsel %vm1675_vm1, %v1674_v48, %v2190_v51  ;;  %v1712_v39 = vsel %vm1675_vm1, %v1711_v49, %v2191_v50 }
 0x441   : > { %v2199_v21 = vpop.permute.xlu1 %2198 }
 0x442   : > { %v2201_v34 = vunpack.i.h.bf16 %v2199_v21  ;;  %v2200_v53 = vunpack.i.l.bf16 %v2199_v21 }
 0x444   : > { %v1678_v27 = vsel %vm1677_vm10, %v1676_v12, %v2200_v53  ;;  %v1713_v54 = vsel %vm1677_vm10, %v1712_v39, %v2201_v34 }
 0x445   : > { %v1714_v56 = vpack.c.bf16 %v1713_v54, %v1678_v27  ;;  %v2205_v27 = vld [vmem:[%s3001_s10] ss:$0 sm:$0xff] }
 0x447   : > { %2063 = vmatmul.msk.bf16.vlgmr.msra.gmra.mxu2 %vm427_vm0, %v1714_v56 }
 0x4ca   : > { %v1747_v59 = vpop.f32.mrf.mxu2 }
 0x4cb   : > { %v1748_v60 = vadd.f32 %v2204_v35, %v1747_v59 }
 0x4cd   : > { %v2919_v19 = vadd.f32 %v2916_v37, %v1748_v60 }
 0x4cf   : > { %v1753_v38 = vsel %vm427_vm0, %v2919_v19, 0.0  ;;  %v1764_v8 = vmul.f32 %v2919_v19, %v2919_v19 }
 0x4d0   : > { %1754 = vadd.xlane.f32.xlu1 %v1753_v38 }
 0x4d1   : > { %v1765_v2 = vsel %vm427_vm0, %v1764_v8, 0.0 }
 0x4d2   : > { %v1749_v62 = vpop.f32.mrf.mxu2 }
 0x4d3   : > { %v1750_v52 = vadd.f32 %v2204_v35, %v1749_v62 }
 0x4d5   : > { %v1785_v9 = vadd.f32 %v2916_v37, %v1750_v52 }
 0x4d7   : > { %v1786_v3 = vsel %vm427_vm0, %v1785_v9, 0.0  ;;  %v1790_v11 = vmul.f32 %v1785_v9, %v1785_v9 }
 0x4d8   : > { %1787 = vadd.xlane.f32.xlu0 %v1786_v3 }
 0x4d9   : > { %v1791_v1 = vsel %vm427_vm0, %v1790_v11, 0.0 }
 0x4da   : > { %1792 = vadd.xlane.f32.xlu2 %v1791_v1 }
 0x4e0   : > { %1766 = vadd.xlane.f32.xlu0 %v1765_v2 }
 0x543   : > { %v1755_v57 = vpop.xlane.xlu1 %1754 }
 0x544   : > { %v1763_v10 = vmul.f32 %v2935_v55, %v1755_v57 }
 0x546   : > { %v1769_v14 = vmul.f32 %v1763_v10, %v1763_v10  ;;  %v1772_v34 = vsub.f32 %v2919_v19, %v1763_v10 }
 0x54b   : > { %v1788_v30 = vpop.xlane.xlu0 %1787 }
 0x54c   : > { %v1789_v44 = vmul.f32 %v1788_v30, %v2935_v55 }
 0x54d   : > { %v1793_v13 = vpop.xlane.xlu2 %1792 }
 0x54e   : > { %v1795_v15 = vmul.f32 %v1789_v44, %v1789_v44  ;;  %v1794_v16 = vmul.f32 %v1793_v13, %v2935_v55  ;;  %v1798_v32 = vsub.f32 %v1785_v9, %v1789_v44 }
 0x550   : > { %v1796_v25 = vsub.f32 %v1794_v16, %v1795_v15 }
 0x552   : > { %v1797_v29 = vmax.f32 %v1796_v25, 0.0 }
 0x553   : > { %v1767_v42 = vpop.xlane.xlu0 %1766 }
 0x554   : > { %v1799_v31 = vadd.f32 1e-05, %v1797_v29  ;;  %v1768_v33 = vmul.f32 %v1767_v42, %v2935_v55 }
 0x556   : > { %2272 = vrsqrt.f32 %v1799_v31  ;;  %v1770_v24 = vsub.f32 %v1768_v33, %v1769_v14  ;;  %vm1806_vm12 = vweird.f32 %v1799_v31 }
 0x558   : > { %v1771_v40 = vmax.f32 %v1770_v24, 0.0 }
 0x55a   : > { %v1773_v4 = vadd.f32 1e-05, %v1771_v40 }
 0x55c   : > { %v2273_v43 = vpop.eup %2272  ;;  %2274 = vrsqrt.f32 %v1773_v4  ;;  %vm1780_vm15 = vweird.f32 %v1773_v4 }
 0x55d   : > { %v1801_v0 = vmul.f32 %v2273_v43, %v1799_v31  ;;  %vm1807_vm11 = vweird.f32 %v2273_v43 }
 0x55e   : > { %vm1808_vm13 = vmor %vm1806_vm12, %vm1807_vm11 }
 0x55f   : > { %v1802_v20 = vmul.f32 %v2273_v43, %v1801_v0 }
 0x561   : > { %v1803_v18 = vmul.f32 0.5, %v1802_v20 }
 0x562   : > { %v2275_v45 = vpop.eup %2274 }
 0x563   : > { %v1804_v46 = vsub.f32 1.5, %v1803_v18  ;;  %v1775_v17 = vmul.f32 %v2275_v45, %v1773_v4  ;;  %vm1781_vm14 = vweird.f32 %v2275_v45 }
 0x564   : > { %vm1782_vm4 = vmor %vm1780_vm15, %vm1781_vm14 }
 0x565   : > { %v1805_v41 = vmul.f32 %v2273_v43, %v1804_v46  ;;  %v1776_v47 = vmul.f32 %v2275_v45, %v1775_v17 }
 0x567   : > { %v1809_v58 = vsel %vm1808_vm13, %v2273_v43, %v1805_v41  ;;  %v1777_v48 = vmul.f32 0.5, %v1776_v47 }
 0x568   : > { %v1810_v49 = vmul.f32 %v1809_v58, %v1798_v32 }
 0x569   : > { %v1778_v50 = vsub.f32 1.5, %v1777_v48 }
 0x56a   : > { %v1816_v51 = vpack.c.bf16 %v1810_v49, %v1810_v49 }
 0x56b   : > { %v1779_v21 = vmul.f32 %v2275_v45, %v1778_v50 }
 0x56c   : > { %2072 = vmatmul.msk.bf16.vlgmr.msra.gmra.mxu3 %vm427_vm0, %v1816_v51 }
 0x56d   : > { %v1783_v53 = vsel %vm1782_vm4, %v2275_v45, %v1779_v21 }
 0x56e   : > { %v1784_v12 = vmul.f32 %v1783_v53, %v1772_v34 }
 0x570   : > { %v1811_v39 = vpack.c.bf16 %v1784_v12, %v1784_v12 }
 0x572   : > { %2081 = vmatmul.msk.bf16.vlgmr.msrb.gmra.mxu0 %vm427_vm0, %v1811_v39 }
 0x5ef   : > { %v1845_v54 = vpop.f32.mrf.mxu3  ;;  %v1873_v56 = vpop.f32.mrf.mxu0 }
 0x5f0   : > { %v1874_v35 = vadd.f32 %v1873_v56, %v1845_v54 }
 0x5f2   : > { %v1881_v59 = vadd.f32 %v2205_v27, %v1874_v35 }
 0x5f4   : > { %v1882_v60 = vmax.f32 %v1881_v59, 0.0 }
 0x5f6   : > { %v1883_v38 = vadd.f32 %v2916_v37, %v1882_v60 }
 0x5f7   : > { %v1847_v19 = vpop.f32.mrf.mxu3  ;;  %v1875_v62 = vpop.f32.mrf.mxu0 }
 0x5f8   : > { %v1884_v52 = vsel %vm427_vm0, %v1883_v38, 0.0  ;;  %v1888_v9 = vmul.f32 %v1883_v38, %v1883_v38 }
 0x5f9   : > { %1885 = vadd.xlane.f32.xlu2 %v1884_v52 }
 0x5fa   : > { %v1889_v3 = vsel %vm427_vm0, %v1888_v9, 0.0 }
 0x5fb   : > { %1890 = vadd.xlane.f32.xlu1 %v1889_v3 }
 0x66c   : > { %v1886_v11 = vpop.xlane.xlu2 %1885 }
 0x66d   : > { %v1887_v1 = vmul.f32 %v1886_v11, %v2935_v55 }
 0x66e   : > { %v1891_v8 = vpop.xlane.xlu1 %1890 }
 0x66f   : > { %v1893_v2 = vmul.f32 %v1887_v1, %v1887_v1  ;;  %v1892_v28 = vmul.f32 %v1891_v8, %v2935_v55  ;;  %v1896_v55 = vsub.f32 %v1883_v38, %v1887_v1 }
 0x671   : > { %v1894_v23 = vsub.f32 %v1892_v28, %v1893_v2 }
 0x673   : > { %v1895_v37 = vmax.f32 %v1894_v23, 0.0 }
 0x675   : > { %v1897_v36 = vadd.f32 1e-05, %v1895_v37 }
 0x677   : > { %2276 = vrsqrt.f32 %v1897_v36  ;;  %vm1904_vm6 = vweird.f32 %v1897_v36 }
 0x67d   : > { %v2277_v5 = vpop.eup %2276 }
 0x67e   : > { %v1899_v61 = vmul.f32 %v2277_v5, %v1897_v36  ;;  %vm1905_vm5 = vweird.f32 %v2277_v5 }
 0x67f   : > { %vm1906_vm7 = vmor %vm1904_vm6, %vm1905_vm5 }
 0x680   : > { %v1900_v26 = vmul.f32 %v2277_v5, %v1899_v61 }
 0x682   : > { %v1901_v63 = vmul.f32 0.5, %v1900_v26 }
 0x684   : > { %v1902_v7 = vsub.f32 1.5, %v1901_v63 }
 0x686   : > { %v1903_v30 = vmul.f32 %v2277_v5, %v1902_v7 }
 0x688   : > { %v1907_v44 = vsel %vm1906_vm7, %v2277_v5, %v1903_v30 }
 0x689   : > { %v1908_v6 = vmul.f32 %v1907_v44, %v1896_v55 }
 0x68b   : > { %1909 = vst.msk [vmem:[%s392_s29] sm:$0xff] %vm427_vm0, %v1908_v6 }
 0x68c   : > { %2306 = shalt.err (!%p2303_p3)
}
 0x68d   : > { %2097 = dma.vmem_to_hbm [thread:$0]  (%p2457_p5), %s1924_s30, 128, %s1926_s12, %s1911_s21  }
 0x68e PF: > { %p2103_p4 = scmp.ge.s32.totalorder %s2341_s20, 2  ;;  %s1937_s15 = sand.u32 1, %s2329_s17  }
 0x68f   : > { %s1938_s25 = scalar_lea.sflag [#allocation3], %s1937_s15 }
 0x690   : > { %p2100_p7 = pnand %p2103_p4, %p2461_p6 }
 0x692   : > { %p2101_p8 = pneg %p2100_p7 }
 0x694   : > { %2324 = dma.done.wait (%p2101_p8), %s1938_s25, 128  }
 0x695   : > { %2326 = vsyncadd (%p2101_p8), %s1938_s25, 4294967168  ;;  %s3012_s29 = sld [smem:[#allocation5_spill]]  ;;  %p21_p9 = scmp.ge.s32.totalorder %s2444_s23, 4  }
 0x696   : > { %s3013_s19 = sld [smem:[#allocation6_spill]]  ;;  %s3014_s17 = smov %s2333_s18 }
 0x697   : > { %s3016_s20 = smov %s2444_s23  ;;  %23 = sbr.rel (!%p21_p9) target bundleno = 3 (0x3), region = 102 }
 0x69b   : > { %s3015_s18 = smov %s3012_s29 }
 0x69c   :  { %1944 = vsyncpa [#allocation3], 1 }
 0x69d   :  { %1946 = vsyncpa [#allocation3 + $0x1], 1 }

</bundles_post_ra>
